<compile_context>
chip_gen: v5e
topology: v5e:2x2
jax: 0.10.0
libtpu: 0.0.40
codegen_flags: <defaults>
</compile_context>

<pallas_src>
import functools
from dataclasses import dataclass

import jax
import jax.numpy as jnp
import numpy as np
from jax.experimental import pallas as pl
from jax.experimental.pallas import tpu as pltpu


@dataclass(frozen=True)
class ECTConfig:
    radius: float = 1.1
    bump_steps: int = 16
    num_thetas: int = 8
    ect_type: str = "points"
    normalized: bool = False
    scale: float = 100.0


def _round_up(a: int, b: int) -> int:
    return (a + b - 1) // b * b


def _choose_t_block(T: int, D: int, max_lanes: int = 1024) -> int:
    """Largest bump-step block whose fused lane width (t_block * D) is legal
    (<= max_lanes and a multiple of 128 for unmasked lane-dense stores)."""
    if T * D <= max_lanes and (T * D) % 128 == 0:
        return T
    for tb in range(T, 0, -1):
        if T % tb == 0 and tb * D <= max_lanes and (tb * D) % 128 == 0:
            return tb
    # Fallback: single (possibly masked) block. Correct, just not lane-dense.
    return T


def _choose_tile_n(n_pad: int) -> int:
    """tile_n must divide n_pad (a multiple of 128); cap at 512 so padded-row
    waste is bounded and VMEM temporaries stay small on v7x."""
    for tn in (512, 384, 256, 128):
        if tn <= n_pad and n_pad % tn == 0:
            return tn
    return n_pad


def _tpu_generation() -> int:
    """Best-effort TPU generation from device_kind; 0 if unknown (safe defaults)."""
    try:
        kind = jax.devices()[0].device_kind.lower()
    except Exception:
        return 0
    for gen in (7, 6, 5, 4):
        if f"v{gen}" in kind or f"tpu{gen}" in kind or f"tpu {gen}" in kind:
            return gen
    return 0


# ---------------------------------------------------------------------------
# WDECT (points) kernel
# ---------------------------------------------------------------------------
def _wdect_points_kernel(lin_ref, nh_ref, bidx_ref, out_ref, *,
                         half_scale, t_rep, num_graphs, eup_dtype):
    """Grid = (core_split [parallel], t_blocks [parallel], node_tiles [arbitrary]).

    lin_ref:  [1, 1, Tb*D]  lin value per fused (bump-step, direction) lane
    nh_ref:   [tile_n, D]   node heights for this node tile (f32)
    bidx_ref: [1, tile_n]   graph index per node (int32, -1 for padding)
    out_ref:  [1, B, Tb*D]  f32 ECT accumulator (VMEM-resident across node tiles)
    """
    n = pl.program_id(2)

    @pl.when(n == 0)
    def _():
        out_ref[...] = jnp.zeros_like(out_ref)

    # Replicate nh over fused bump-step lanes: lane t*D + d holds nh[:, d].
    nh_rep = jnp.tile(nh_ref[...], (1, t_rep))                        # [tile_n, Tb*D]

    # sigmoid(scale*(lin-nh)) = 0.5 + 0.5*tanh(0.5*scale*(lin-nh)):
    # a single EUP transcendental per element (bf16-packed on v6e/v7x).
    zt = ((lin_ref[0] - nh_rep) * jnp.float32(half_scale)).astype(eup_dtype)
    half = jnp.asarray(0.5, dtype=eup_dtype)
    p = half + half * jnp.tanh(zt)                                    # [tile_n, Tb*D]

    # Build the one-hot segment matrix in-kernel (VPU filler under the EUP
    # bound) instead of streaming a dense [B, N] one-hot from HBM.
    tile_n = bidx_ref.shape[1]
    gid = jax.lax.broadcasted_iota(jnp.int32, (num_graphs, tile_n), 0)
    seg = (bidx_ref[...] == gid).astype(jnp.bfloat16)                 # [B, tile_n]

    # Segment-sum over this node tile: one MXU matmul, bf16 in / f32 acc.
    out_ref[...] += jnp.dot(seg, p.astype(jnp.bfloat16),
                            preferred_element_type=jnp.float32)[None]


def wdect_points_flat(x, node_weights, batch_idx, v, num_graphs, config: ECTConfig):
    """Returns the flattened ECT [B, T*D], row-major over (bump_step, direction)."""
    x = x.astype(jnp.float32)
    v = v.astype(jnp.float32)
    N, _ = x.shape
    D = v.shape[1]
    T = config.bump_steps
    B = num_graphs

    # nh = (x * w) @ v : K = spatial dim (tiny) -> leave to XLA.
    nh = (x * node_weights.astype(jnp.float32)[:, None]) @ v          # [N, D]

    # Fuse bump steps into the lane axis.
    t_block = _choose_t_block(T, D)
    n_tb = T // t_block
    td_b = t_block * D
    # TODO(synk): for configs with T*D > 1024 (n_tb > 1), loop the t-blocks
    # inside the kernel over a node-only grid to avoid re-streaming nh n_tb x.

    lin = jnp.linspace(-config.radius, config.radius, T, dtype=jnp.float32)
    lin_lanes = jnp.repeat(lin, D).reshape(n_tb, 1, td_b)             # lane j = t*D + d

    # Node (reduction) tiling: pad only to a multiple of 128, tile_n divides it.
    n_pad = _round_up(max(N, 1), 128)
    tile_n = _choose_tile_n(n_pad)
    n_tiles = n_pad // tile_n
    nh = jnp.pad(nh, ((0, n_pad - N), (0, 0)))
    bidx = jnp.pad(batch_idx.astype(jnp.int32), (0, n_pad - N),
                   constant_values=-1).reshape(1, n_pad)

    gen = _tpu_generation()
    # bf16 EUP only where the hardware has a bf16 transcendental path.
    eup_dtype = jnp.bfloat16 if gen in (6, 7) else jnp.float32
    # v7x has 2 TensorCores: split the node range into private partial sums.
    n_split = 2 if (gen >= 7 and n_tiles >= 2 and n_tiles % 2 == 0) else 1
    tiles_per_split = n_tiles // n_split

    kernel = functools.partial(_wdect_points_kernel,
                               half_scale=0.5 * float(config.scale),
                               t_rep=t_block, num_graphs=B, eup_dtype=eup_dtype)

    partial_ect = pl.pallas_call(
        kernel,
        out_shape=jax.ShapeDtypeStruct((n_split, B, T * D), jnp.float32),
        grid_spec=pltpu.PrefetchScalarGridSpec(
            num_scalar_prefetch=0,
            grid=(n_split, n_tb, tiles_per_split),
            in_specs=[
                # lin lanes for this t-block
                pl.BlockSpec((1, 1, td_b), lambda c, tb, n: (tb, 0, 0)),
                # node heights for this node tile
                pl.BlockSpec((tile_n, D),
                             lambda c, tb, n: (c * tiles_per_split + n, 0)),
                # graph indices for this node tile (one-hot built in-kernel)
                pl.BlockSpec((1, tile_n),
                             lambda c, tb, n: (0, c * tiles_per_split + n)),
            ],
            out_specs=pl.BlockSpec((1, B, td_b), lambda c, tb, n: (c, 0, tb)),
        ),
        compiler_params=pltpu.CompilerParams(
            dimension_semantics=("parallel", "parallel", "arbitrary"),
            vmem_limit_bytes=32 * 1024 * 1024,
        ),
    )(lin_lanes, nh, bidx)

    flat = jnp.sum(partial_ect, axis=0)                               # [B, T*D] (tiny)

    if config.normalized:
        # normalize(ect): per-graph max over (T, D) == max over the flat axis.
        flat = flat / jnp.max(flat, axis=1, keepdims=True)
    return flat
    # TODO(synk): ect_type == 'edges'/'faces' needs a gather + max over
    # edge_index / face simplices (nh[edge_index].max(dim=0)); not implemented.


def wdect_classifier_forward(x, node_weights, batch_idx, v, num_graphs,
                             config: ECTConfig, w1, b1, w2, b2):
    """Pallas implementation of WDECTClassifier.forward -> (logits, flat)."""
    flat = wdect_points_flat(x, node_weights, batch_idx, v, num_graphs, config)
    # Per perf review: the [B,128]@[128,32]->relu->[32,4] head is a few kFLOPs;
    # a dedicated pallas_call costs more in launch/DMA than the compute. XLA it.
    h = jnp.maximum(flat @ w1.astype(jnp.float32) + b1.astype(jnp.float32), 0.0)
    logits = h @ w2.astype(jnp.float32) + b2.astype(jnp.float32)
    return logits, flat


# ---------------------------------------------------------------------------
# Pure-JAX reference (mirrors the PyTorch module)
# ---------------------------------------------------------------------------
def _reference_forward(x, node_weights, batch_idx, v, num_graphs,
                       config: ECTConfig, w1, b1, w2, b2):
    nh = (x * node_weights[:, None]) @ v                                   # [N, D]
    lin = jnp.linspace(-config.radius, config.radius, config.bump_steps)   # [T]
    ecc = jax.nn.sigmoid(config.scale * (lin[:, None, None] - nh[None]))   # [T, N, D]
    seg = (batch_idx[None, :] == jnp.arange(num_graphs)[:, None]).astype(jnp.float32)
    ect = jnp.einsum('bn,tnd->btd', seg, ecc)                              # [B, T, D]
    if config.normalized:
        ect = ect / jnp.max(ect, axis=(1, 2), keepdims=True)
    flat = ect.reshape(num_graphs, -1)                                     # [B, T*D]
    h = jax.nn.relu(flat @ w1 + b1)
    logits = h @ w2 + b2
    return logits, flat


if __name__ == "__main__":
    config = ECTConfig(radius=1.1, bump_steps=16, num_thetas=8,
                       ect_type="points", normalized=False, scale=100.0)

    # Small deterministic synthetic "point cloud batch":
    #   2 graphs, 64 nodes total (32 per graph), 3-D coords, 8 directions,
    #   16 bump steps (T*D = 128), hidden 32, 4 classes.
    num_graphs = 2
    num_nodes = 64
    dim = 3
    hidden_dim = 32
    num_classes = 4
    in_dim = config.num_thetas * config.bump_steps   # 128

    key = jax.random.PRNGKey(0)
    kx, kw, kv, k1, k2, k3, k4 = jax.random.split(key, 7)
    x = jax.random.normal(kx, (num_nodes, dim), dtype=jnp.float32) * 0.5
    node_weights = jax.random.uniform(kw, (num_nodes,), dtype=jnp.float32) + 0.1
    batch_idx = jnp.repeat(jnp.arange(num_graphs, dtype=jnp.int32),
                           num_nodes // num_graphs)

    # Directions v (module __init__: randn normalized along dim 0).
    v = jax.random.normal(kv, (dim, config.num_thetas), dtype=jnp.float32)
    v = v / jnp.linalg.norm(v, axis=0, keepdims=True)

    # fc1 / fc2 parameters (stored as [in, out]; same weights used in reference).
    w1 = jax.random.normal(k1, (in_dim, hidden_dim), dtype=jnp.float32) / np.sqrt(in_dim)
    b1 = jax.random.normal(k2, (hidden_dim,), dtype=jnp.float32) * 0.1
    w2 = jax.random.normal(k3, (hidden_dim, num_classes), dtype=jnp.float32) / np.sqrt(hidden_dim)
    b2 = jax.random.normal(k4, (num_classes,), dtype=jnp.float32) * 0.1

    logits, flat = wdect_classifier_forward(x, node_weights, batch_idx, v,
                                            num_graphs, config, w1, b1, w2, b2)
    logits = jax.block_until_ready(logits)
    flat = jax.block_until_ready(flat)

    ref_logits, ref_flat = _reference_forward(x, node_weights, batch_idx, v,
                                              num_graphs, config, w1, b1, w2, b2)

    # Tolerance loosened for bf16 MXU inputs (+ bf16 tanh on v6e/v7x);
    # z and the accumulation stay f32.
    np.testing.assert_allclose(np.asarray(flat), np.asarray(ref_flat),
                               rtol=2e-2, atol=1e-1)
    np.testing.assert_allclose(np.asarray(logits), np.asarray(ref_logits),
                               rtol=2e-2, atol=1e-1)
    print("KERNEL_OK")
</pallas_src>

<mosaic_0001>
module attributes {stable_mosaic.version = 11 : i64} {
  func.func @_wdect_points_kernel(%arg0: i32, %arg1: i32, %arg2: i32, %arg3: memref<1x1x128xf32, #tpu.memory_space<vmem>>, %arg4: memref<128x8xf32, #tpu.memory_space<vmem>>, %arg5: memref<1x128xi32, #tpu.memory_space<vmem>>, %arg6: memref<1x2x128xf32, #tpu.memory_space<vmem>>) attributes {dimension_semantics = [#tpu.dimension_semantics<parallel>, #tpu.dimension_semantics<parallel>, #tpu.dimension_semantics<arbitrary>], iteration_bounds = array<i64: 1, 1, 1>, scalar_prefetch = 0 : i64, scratch_operands = 0 : i64, tpu.core_type = #tpu.core_type<tc>, window_params = [{transform_indices = @transform_0, window_bounds = array<i64: 1, 1, 128>}, {transform_indices = @transform_1, window_bounds = array<i64: 128, 8>}, {transform_indices = @transform_2, window_bounds = array<i64: 1, 128>}, {transform_indices = @transform_3, window_bounds = array<i64: 1, 2, 128>}]} {
    %c0_i32 = arith.constant 0 : i32
    %0 = arith.cmpi eq, %arg2, %c0_i32 : i32
    %1 = arith.extui %0 : i1 to i32
    %c0_i32_0 = arith.constant 0 : i32
    %2 = arith.cmpi ne, %1, %c0_i32_0 : i32
    scf.if %2 {
      %cst_16 = arith.constant 0.000000e+00 : f32
      %29 = vector.broadcast %cst_16 : f32 to vector<1x2x128xf32>
      %c0_17 = arith.constant 0 : index
      %c0_18 = arith.constant 0 : index
      %c0_19 = arith.constant 0 : index
      %30 = vector.load %arg6[%c0_17, %c0_18, %c0_19] : memref<1x2x128xf32, #tpu.memory_space<vmem>>, vector<1x2x128xf32>
      tpu.vector_store %arg6[%c0_17, %c0_18, %c0_19], %29 {strides = array<i32>} : memref<1x2x128xf32, #tpu.memory_space<vmem>>, vector<1x2x128xf32>,
    } else {
    }
    %c0 = arith.constant 0 : index
    %c0_1 = arith.constant 0 : index
    %3 = vector.load %arg4[%c0, %c0_1] : memref<128x8xf32, #tpu.memory_space<vmem>>, vector<128x8xf32>
    %4 = tpu.concatenate %3, %3, %3, %3, %3, %3, %3, %3, %3, %3, %3, %3, %3, %3, %3, %3 in 1 : vector<128x8xf32>, vector<128x8xf32>, vector<128x8xf32>, vector<128x8xf32>, vector<128x8xf32>, vector<128x8xf32>, vector<128x8xf32>, vector<128x8xf32>, vector<128x8xf32>, vector<128x8xf32>, vector<128x8xf32>, vector<128x8xf32>, vector<128x8xf32>, vector<128x8xf32>, vector<128x8xf32>, vector<128x8xf32> -> vector<128x128xf32>
    %c0_2 = arith.constant 0 : index
    %c0_3 = arith.constant 0 : index
    %c0_4 = arith.constant 0 : index
    %5 = vector.load %arg3[%c0_2, %c0_3, %c0_4] : memref<1x1x128xf32, #tpu.memory_space<vmem>>, vector<1x1x128xf32>
    %6 = vector.shape_cast %5 : vector<1x1x128xf32> to vector<1x128xf32>
    %7 = vector.broadcast %6 : vector<1x128xf32> to vector<128x128xf32>
    %8 = arith.subf %7, %4 : vector<128x128xf32>
    %cst = arith.constant 5.000000e+01 : f32
    %9 = vector.broadcast %cst : f32 to vector<128x128xf32>
    %10 = arith.mulf %8, %9 : vector<128x128xf32>
    %11 = math.tanh %10 : vector<128x128xf32>
    %cst_5 = arith.constant 5.000000e-01 : f32
    %12 = vector.broadcast %cst_5 : f32 to vector<128x128xf32>
    %13 = arith.mulf %12, %11 : vector<128x128xf32>
    %cst_6 = arith.constant 5.000000e-01 : f32
    %14 = vector.broadcast %cst_6 : f32 to vector<128x128xf32>
    %15 = arith.addf %14, %13 : vector<128x128xf32>
    %16 = tpu.iota {dimensions = array<i32: 0>} : vector<2x128xi32>
    %c0_7 = arith.constant 0 : index
    %c0_8 = arith.constant 0 : index
    %17 = vector.load %arg5[%c0_7, %c0_8] : memref<1x128xi32, #tpu.memory_space<vmem>>, vector<1x128xi32>
    %18 = vector.broadcast %17 : vector<1x128xi32> to vector<2x128xi32>
    %19 = arith.cmpi eq, %18, %16 : vector<2x128xi32>
    %20 = arith.extui %19 : vector<2x128xi1> to vector<2x128xi32>
    %21 = arith.sitofp %20 : vector<2x128xi32> to vector<2x128xf32>
    %22 = arith.truncf %21 : vector<2x128xf32> to vector<2x128xbf16>
    %c0_9 = arith.constant 0 : index
    %c0_10 = arith.constant 0 : index
    %c0_11 = arith.constant 0 : index
    %23 = vector.load %arg6[%c0_9, %c0_10, %c0_11] : memref<1x2x128xf32, #tpu.memory_space<vmem>>, vector<1x2x128xf32>
    %24 = arith.truncf %15 : vector<128x128xf32> to vector<128x128xbf16>
    %cst_12 = arith.constant dense<0.000000e+00> : vector<2x128xf32>
    %25 = tpu.matmul %22, %24, %cst_12 {dimension_numbers = #tpu.dot_dimension_numbers<[1], [0], [0], [1], [0, 0, 1, 1], [], []>} : vector<2x128xbf16>, vector<128x128xbf16>, vector<2x128xf32> -> vector<2x128xf32>
    %26 = vector.shape_cast %25 : vector<2x128xf32> to vector<1x2x128xf32>
    %27 = arith.addf %23, %26 : vector<1x2x128xf32>
    %c0_13 = arith.constant 0 : index
    %c0_14 = arith.constant 0 : index
    %c0_15 = arith.constant 0 : index
    %28 = vector.load %arg6[%c0_13, %c0_14, %c0_15] : memref<1x2x128xf32, #tpu.memory_space<vmem>>, vector<1x2x128xf32>
    tpu.vector_store %arg6[%c0_13, %c0_14, %c0_15], %27 {strides = array<i32>} : memref<1x2x128xf32, #tpu.memory_space<vmem>>, vector<1x2x128xf32>,
    return
  }
  func.func @transform_0(%arg0: i32, %arg1: i32, %arg2: i32) -> (i32, i32, i32) {
    %c0_i32 = arith.constant 0 : i32
    %c0_i32_0 = arith.constant 0 : i32
    %c0_i32_1 = arith.constant 0 : i32
    return %arg1, %c0_i32, %c0_i32_0 : i32, i32, i32
  }
  func.func @transform_1(%arg0: i32, %arg1: i32, %arg2: i32) -> (i32, i32) {
    %c1_i32 = arith.constant 1 : i32
    %0 = arith.muli %arg0, %c1_i32 : i32
    %1 = arith.addi %0, %arg2 : i32
    %c0_i32 = arith.constant 0 : i32
    %c0_i32_0 = arith.constant 0 : i32
    return %1, %c0_i32 : i32, i32
  }
  func.func @transform_2(%arg0: i32, %arg1: i32, %arg2: i32) -> (i32, i32) {
    %c1_i32 = arith.constant 1 : i32
    %0 = arith.muli %arg0, %c1_i32 : i32
    %1 = arith.addi %0, %arg2 : i32
    %c0_i32 = arith.constant 0 : i32
    %c0_i32_0 = arith.constant 0 : i32
    return %c0_i32, %1 : i32, i32
  }
  func.func @transform_3(%arg0: i32, %arg1: i32, %arg2: i32) -> (i32, i32, i32) {
    %c0_i32 = arith.constant 0 : i32
    %c0_i32_0 = arith.constant 0 : i32
    return %arg0, %c0_i32, %arg1 : i32, i32, i32
  }
}

</mosaic_0001>

<bundles_post_ra>
// kernel: tpu_custom_call.1
= control target key start
LH: loop header
LB: loop body
LE: loop exit
PB: predicated region body
PF: predicated region fallthrough
CT: control target
= control target key end

     0   :  { %s1297_s18 = smov 8   ;;  %s2558_s0 = inlined_call_operand.vmem [shape: f32[1,1,128], index: 0, kind: input, shape index: {}]   ;;  %s2559_s1 = inlined_call_operand.vmem [shape: f32[128,8], index: 1, kind: input, shape index: {}]   ;;  %s2560_s2 = inlined_call_operand.vmem [shape: s32[1,128], index: 2, kind: input, shape index: {}]   ;;  %s2561_s3 = inlined_call_operand.hbm [shape: f32[1,2,128], index: 3, kind: output, shape index: {}]  }
   0x1   :  { %v1338_v0 = vld [vmem:[%s2559_s1 + $0x20] sm:$0xff]  ;;  %v1343_v1 = vld [vmem:[%s2559_s1 + $0x10] sm:$0xff]  ;;  %v1359_v3 = vld [vmem:[%s2559_s1 + $0x28] sm:$0xff] }
   0x2   :  { %v1348_v2 = vld [vmem:[%s2559_s1] sm:$0xff]  ;;  %96 = vrot.lane.b32.xlu2 %v1338_v0, %s1297_s18  ;;  %92 = vrot.lane.b32.xlu1 %v1343_v1, %s1297_s18  ;;  %v1364_v4 = vld [vmem:[%s2559_s1 + $0x18] sm:$0xff] }
   0x3   :  { %88 = vrot.lane.b32.xlu0 %v1348_v2, %s1297_s18 }
   0x4   :  { %8 = vsyncpa [#allocation3], 0  ;;  %v1369_v5 = vld [vmem:[%s2559_s1 + $0x8] sm:$0xff]  ;;  %v1380_v6 = vld [vmem:[%s2559_s1 + $0x40] sm:$0xff]  ;;  %s1298_s19 = smov 16   ;;  %s1300_s20 = smov 32  }
   0x5   :  { %v1385_v7 = vld [vmem:[%s2559_s1 + $0x38] sm:$0xff]  ;;  %v1390_v8 = vld [vmem:[%s2559_s1 + $0x30] sm:$0xff]  ;;  %v1411_v11 = vld [vmem:[%s2559_s1 + $0x48] sm:$0xff]  ;;  %s1301_s21 = smov 40   ;;  %s1302_s22 = smov 48   ;;  %vm808_vm0 = vcmask 64512  }
   0x6   :  { %v1401_v9 = vld [vmem:[%s2559_s1 + $0x58] sm:$0xff]  ;;  %v1406_v10 = vld [vmem:[%s2559_s1 + $0x50] sm:$0xff]  ;;  %2566 = vst [vmem:[#allocation5_spill] sm:$0xff] %v1411_v11  ;;  %v1427_v13 = vld [vmem:[%s2559_s1 + $0x68] sm:$0xff]  ;;  %s1303_s23 = smov 56   ;;  %s1304_s24 = smov 64  }
   0x7   :  { %v1422_v12 = vld [vmem:[%s2559_s1 + $0x70] sm:$0xff]  ;;  %v1432_v14 = vld [vmem:[%s2559_s1 + $0x60] sm:$0xff]  ;;  %v1443_v15 = vld [vmem:[%s2559_s1 + $0x78] sm:$0xff]  ;;  %s1305_s25 = smov 72   ;;  %vm825_vm1 = vcmask 130048   ;;  %vm842_vm2 = vcmask 195584  }
   0x8   :  { %2567 = vst [vmem:[#allocation6_spill] sm:$0xff] %v1432_v14  ;;  %vm859_vm3 = vcmask 261120   ;;  %vm876_vm4 = vcmask 326656   ;;  %vm893_vm5 = vcmask 392192   ;;  %vm910_vm6 = vcmask 457728   ;;  %s1306_s26 = smov 80  }
   0x9   :  { %vm927_vm7 = vcmask 523264   ;;  %s1307_s27 = smov 88   ;;  %vm944_vm8 = vcmask 588800   ;;  %s1308_s28 = smov 96   ;;  %vm961_vm9 = vcmask 654336   ;;  %vm978_vm10 = vcmask 719872  }
   0xa   :  { %98 = vrot.lane.b32.xlu2 %v1359_v3, %s1297_s18  ;;  %94 = vrot.lane.b32.xlu1 %v1364_v4, %s1297_s18  ;;  %s1309_s29 = smov 104   ;;  %s1310_s30 = smov 112   ;;  %vm995_vm11 = vcmask 785408   ;;  %vm1012_vm12 = vcmask 850944   ;;  %vm1029_vm13 = vcmask 916480   ;;  %vm1046_vm14 = vcmask 982016  }
   0xb   :  { %90 = vrot.lane.b32.xlu0 %v1369_v5, %s1297_s18  ;;  %s1311_s4 = smov 120   ;;  %s1186_s8 = sshll.u32 %s2561_s3, 4  ;;  %s1187_s8 = int_to_ptr.hbm [resolvable:$true] %s1186_s8 }
  0x12   :  { %104 = vrot.lane.b32.xlu2 %v1380_v6, %s1297_s18  ;;  %102 = vrot.lane.b32.xlu1 %v1385_v7, %s1297_s18 }
  0x13   :  { %100 = vrot.lane.b32.xlu0 %v1390_v8, %s1297_s18 }
  0x1a   :  { %110 = vrot.lane.b32.xlu2 %v1401_v9, %s1297_s18  ;;  %108 = vrot.lane.b32.xlu1 %v1406_v10, %s1297_s18 }
  0x1b   :  { %106 = vrot.lane.b32.xlu0 %v1411_v11, %s1297_s18 }
  0x22   :  { %116 = vrot.lane.b32.xlu2 %v1422_v12, %s1297_s18  ;;  %114 = vrot.lane.b32.xlu1 %v1427_v13, %s1297_s18 }
  0x23   :  { %112 = vrot.lane.b32.xlu0 %v1432_v14, %s1297_s18 }
  0x2a   :  { %138 = vrot.lane.b32.xlu2 %v1369_v5, %s1298_s19  ;;  %136 = vrot.lane.b32.xlu1 %v1348_v2, %s1298_s19 }
  0x2b   :  { %118 = vrot.lane.b32.xlu0 %v1443_v15, %s1297_s18  ;;  %s1299_s18 = smov 24  }
  0x32   :  { %144 = vrot.lane.b32.xlu2 %v1338_v0, %s1298_s19  ;;  %142 = vrot.lane.b32.xlu1 %v1364_v4, %s1298_s19 }
  0x33   :  { %140 = vrot.lane.b32.xlu0 %v1343_v1, %s1298_s19 }
  0x3a   :  { %150 = vrot.lane.b32.xlu2 %v1385_v7, %s1298_s19  ;;  %148 = vrot.lane.b32.xlu1 %v1390_v8, %s1298_s19 }
  0x3b   :  { %146 = vrot.lane.b32.xlu0 %v1359_v3, %s1298_s19 }
  0x42   :  { %156 = vrot.lane.b32.xlu2 %v1406_v10, %s1298_s19  ;;  %154 = vrot.lane.b32.xlu1 %v1411_v11, %s1298_s19 }
  0x43   :  { %152 = vrot.lane.b32.xlu0 %v1380_v6, %s1298_s19 }
  0x4a   :  { %162 = vrot.lane.b32.xlu2 %v1427_v13, %s1298_s19  ;;  %160 = vrot.lane.b32.xlu1 %v1432_v14, %s1298_s19 }
  0x4b   :  { %158 = vrot.lane.b32.xlu0 %v1401_v9, %s1298_s19 }
  0x52   :  { %184 = vrot.lane.b32.xlu2 %v1348_v2, %s1299_s18  ;;  %166 = vrot.lane.b32.xlu1 %v1443_v15, %s1298_s19 }
  0x53   :  { %164 = vrot.lane.b32.xlu0 %v1422_v12, %s1298_s19 }
  0x5a   :  { %190 = vrot.lane.b32.xlu2 %v1364_v4, %s1299_s18  ;;  %188 = vrot.lane.b32.xlu1 %v1343_v1, %s1299_s18 }
  0x5b   :  { %186 = vrot.lane.b32.xlu0 %v1369_v5, %s1299_s18 }
  0x5c   :  { %v1467_v16 = vpop.permute.xlu2 %96 }
  0x62   :  { %196 = vrot.lane.b32.xlu2 %v1390_v8, %s1299_s18  ;;  %194 = vrot.lane.b32.xlu1 %v1359_v3, %s1299_s18 }
  0x63   :  { %192 = vrot.lane.b32.xlu0 %v1338_v0, %s1299_s18 }
  0x64   :  { %v1472_v17 = vpop.permute.xlu2 %98 }
  0x65   :  { %2568 = vst [vmem:[#allocation7_spill] sm:$0xff] %v1472_v17 }
  0x6a   :  { %202 = vrot.lane.b32.xlu2 %v1411_v11, %s1299_s18  ;;  %200 = vrot.lane.b32.xlu1 %v1380_v6, %s1299_s18 }
  0x6b   :  { %198 = vrot.lane.b32.xlu0 %v1385_v7, %s1299_s18 }
  0x6c   :  { %v1477_v18 = vpop.permute.xlu2 %104 }
  0x6d   :  { %2569 = vst [vmem:[#allocation8_spill] sm:$0xff] %v1477_v18 }
  0x72   :  { %208 = vrot.lane.b32.xlu2 %v1432_v14, %s1299_s18  ;;  %206 = vrot.lane.b32.xlu1 %v1401_v9, %s1299_s18 }
  0x73   :  { %204 = vrot.lane.b32.xlu0 %v1406_v10, %s1299_s18 }
  0x74   :  { %v1482_v19 = vpop.permute.xlu2 %110  ;;  %v1484_v20 = vpop.permute.xlu1 %92 }
  0x75   :  { %2570 = vst [vmem:[#allocation9_spill] sm:$0xff] %v1482_v19  ;;  %v1486_v21 = vpop.permute.xlu0 %88 }
  0x76   :  { %2571 = vst [vmem:[#allocation10_spill] sm:$0xff] %v1484_v20 }
  0x7a   :  { %214 = vrot.lane.b32.xlu2 %v1443_v15, %s1299_s18  ;;  %212 = vrot.lane.b32.xlu1 %v1422_v12, %s1299_s18 }
  0x7b   :  { %210 = vrot.lane.b32.xlu0 %v1427_v13, %s1299_s18 }
  0x7c   :  { %v1491_v22 = vpop.permute.xlu2 %116  ;;  %v1493_v23 = vpop.permute.xlu1 %94 }
  0x7d   :  { %2572 = vst [vmem:[#allocation11_spill] sm:$0xff] %v1493_v23  ;;  %v1495_v24 = vpop.permute.xlu0 %90 }
  0x82   :  { %236 = vrot.lane.b32.xlu2 %v1343_v1, %s1300_s20  ;;  %234 = vrot.lane.b32.xlu1 %v1369_v5, %s1300_s20 }
  0x83   :  { %232 = vrot.lane.b32.xlu0 %v1348_v2, %s1300_s20 }
  0x84   :  { %v1503_v25 = vpop.permute.xlu1 %102  ;;  %v1505_v26 = vpop.permute.xlu2 %138 }
  0x85   :  { %v1507_v27 = vpop.permute.xlu0 %100 }
  0x86   :  { %2573 = vst [vmem:[#allocation12_spill] sm:$0xff] %v1507_v27 }
  0x8a   :  { %242 = vrot.lane.b32.xlu2 %v1359_v3, %s1300_s20  ;;  %240 = vrot.lane.b32.xlu1 %v1338_v0, %s1300_s20 }
  0x8b   :  { %238 = vrot.lane.b32.xlu0 %v1364_v4, %s1300_s20 }
  0x8c   :  { %v1515_v28 = vpop.permute.xlu1 %108  ;;  %v1517_v29 = vpop.permute.xlu2 %144 }
  0x8d   :  { %v1519_v30 = vpop.permute.xlu0 %106 }
  0x8e   :  { %2574 = vst [vmem:[#allocation13_spill] sm:$0xff] %v1519_v30 }
  0x92   :  { %248 = vrot.lane.b32.xlu2 %v1380_v6, %s1300_s20  ;;  %246 = vrot.lane.b32.xlu1 %v1385_v7, %s1300_s20 }
  0x93   :  { %244 = vrot.lane.b32.xlu0 %v1390_v8, %s1300_s20 }
  0x94   :  { %v1527_v31 = vpop.permute.xlu1 %114  ;;  %v1529_v32 = vpop.permute.xlu2 %150 }
  0x95   :  { %v1531_v33 = vpop.permute.xlu0 %112 }
  0x96   :  { %2575 = vst [vmem:[#allocation14_spill] sm:$0xff] %v1531_v33 }
  0x9a   :  { %254 = vrot.lane.b32.xlu2 %v1401_v9, %s1300_s20  ;;  %252 = vrot.lane.b32.xlu1 %v1406_v10, %s1300_s20 }
  0x9b   :  { %250 = vrot.lane.b32.xlu0 %v1411_v11, %s1300_s20 }
  0x9c   :  { %v1539_v34 = vpop.permute.xlu2 %156  ;;  %v1541_v35 = vpop.permute.xlu1 %136 }
  0x9d   :  { %v1543_v36 = vpop.permute.xlu0 %118 }
  0xa2   :  { %260 = vrot.lane.b32.xlu2 %v1422_v12, %s1300_s20  ;;  %258 = vrot.lane.b32.xlu1 %v1427_v13, %s1300_s20 }
  0xa3   :  { %256 = vrot.lane.b32.xlu0 %v1432_v14, %s1300_s20 }
  0xa4   :  { %v1551_v37 = vpop.permute.xlu2 %162  ;;  %v1553_v38 = vpop.permute.xlu1 %142 }
  0xa5   :  { %2576 = vst [vmem:[#allocation15_spill] sm:$0xff] %v1553_v38  ;;  %v1555_v39 = vpop.permute.xlu0 %140 }
  0xa6   :  { %2577 = vst [vmem:[#allocation16_spill] sm:$0xff] %v1555_v39 }
  0xaa   :  { %282 = vrot.lane.b32.xlu2 %v1369_v5, %s1301_s21  ;;  %280 = vrot.lane.b32.xlu1 %v1348_v2, %s1301_s21 }
  0xab   :  { %262 = vrot.lane.b32.xlu0 %v1443_v15, %s1300_s20 }
  0xac   :  { %v1563_v40 = vpop.permute.xlu2 %184  ;;  %v1565_v41 = vpop.permute.xlu1 %148 }
  0xad   :  { %2578 = vst [vmem:[#allocation17_spill] sm:$0xff] %v1565_v41  ;;  %v1567_v42 = vpop.permute.xlu0 %146 }
  0xae   :  { %2579 = vst [vmem:[#allocation18_spill] sm:$0xff] %v1567_v42 }
  0xb2   :  { %288 = vrot.lane.b32.xlu2 %v1338_v0, %s1301_s21  ;;  %286 = vrot.lane.b32.xlu1 %v1364_v4, %s1301_s21 }
  0xb3   :  { %284 = vrot.lane.b32.xlu0 %v1343_v1, %s1301_s21 }
  0xb4   :  { %v1575_v43 = vpop.permute.xlu2 %190  ;;  %v1577_v44 = vpop.permute.xlu1 %154 }
  0xb5   :  { %2580 = vst [vmem:[#allocation19_spill] sm:$0xff] %v1575_v43  ;;  %v1579_v45 = vpop.permute.xlu0 %152 }
  0xb6   :  { %2581 = vst [vmem:[#allocation20_spill] sm:$0xff] %v1577_v44 }
  0xb7   :  { %2582 = vst [vmem:[#allocation21_spill] sm:$0xff] %v1579_v45 }
  0xba   :  { %294 = vrot.lane.b32.xlu2 %v1385_v7, %s1301_s21  ;;  %292 = vrot.lane.b32.xlu1 %v1390_v8, %s1301_s21 }
  0xbb   :  { %290 = vrot.lane.b32.xlu0 %v1359_v3, %s1301_s21 }
  0xbc   :  { %v1587_v46 = vpop.permute.xlu2 %196  ;;  %v1589_v47 = vpop.permute.xlu1 %160 }
  0xbd   :  { %2583 = vst [vmem:[#allocation22_spill] sm:$0xff] %v1587_v46  ;;  %v1591_v48 = vpop.permute.xlu0 %158 }
  0xbe   :  { %2584 = vst [vmem:[#allocation23_spill] sm:$0xff] %v1589_v47 }
  0xbf   :  { %2585 = vst [vmem:[#allocation24_spill] sm:$0xff] %v1591_v48 }
  0xc2   :  { %300 = vrot.lane.b32.xlu2 %v1406_v10, %s1301_s21  ;;  %298 = vrot.lane.b32.xlu1 %v1411_v11, %s1301_s21 }
  0xc3   :  { %296 = vrot.lane.b32.xlu0 %v1380_v6, %s1301_s21 }
  0xc4   :  { %v1599_v49 = vpop.permute.xlu2 %202  ;;  %v1601_v50 = vpop.permute.xlu1 %166 }
  0xc5   :  { %2586 = vst [vmem:[#allocation25_spill] sm:$0xff] %v1599_v49  ;;  %v1603_v51 = vpop.permute.xlu0 %164 }
  0xca   :  { %306 = vrot.lane.b32.xlu2 %v1427_v13, %s1301_s21  ;;  %304 = vrot.lane.b32.xlu1 %v1432_v14, %s1301_s21 }
  0xcb   :  { %302 = vrot.lane.b32.xlu0 %v1401_v9, %s1301_s21 }
  0xcc   :  { %v1611_v52 = vpop.permute.xlu2 %208  ;;  %v1613_v53 = vpop.permute.xlu1 %188 }
  0xcd   :  { %2587 = vst [vmem:[#allocation26_spill] sm:$0xff] %v1611_v52  ;;  %v1615_v54 = vpop.permute.xlu0 %186 }
  0xce   :  { %2588 = vst [vmem:[#allocation27_spill] sm:$0xff] %v1613_v53 }
  0xd2   :  { %328 = vrot.lane.b32.xlu2 %v1348_v2, %s1302_s22  ;;  %310 = vrot.lane.b32.xlu1 %v1443_v15, %s1301_s21 }
  0xd3   :  { %308 = vrot.lane.b32.xlu0 %v1422_v12, %s1301_s21 }
  0xd4   :  { %v1623_v55 = vpop.permute.xlu2 %214  ;;  %v1625_v56 = vpop.permute.xlu1 %194 }
  0xd5   :  { %2589 = vst [vmem:[#allocation28_spill] sm:$0xff] %v1625_v56  ;;  %v1627_v57 = vpop.permute.xlu0 %192 }
  0xda   :  { %334 = vrot.lane.b32.xlu2 %v1364_v4, %s1302_s22  ;;  %332 = vrot.lane.b32.xlu1 %v1343_v1, %s1302_s22 }
  0xdb   :  { %330 = vrot.lane.b32.xlu0 %v1369_v5, %s1302_s22 }
  0xdc   :  { %v1635_v58 = vpop.permute.xlu2 %236  ;;  %v1637_v59 = vpop.permute.xlu1 %200 }
  0xdd   :  { %2590 = vst [vmem:[#allocation29_spill] sm:$0xff] %v1635_v58  ;;  %v1639_v60 = vpop.permute.xlu0 %198 }
  0xde   :  { %2591 = vst [vmem:[#allocation30_spill] sm:$0xff] %v1637_v59 }
  0xe2   :  { %340 = vrot.lane.b32.xlu2 %v1390_v8, %s1302_s22  ;;  %338 = vrot.lane.b32.xlu1 %v1359_v3, %s1302_s22 }
  0xe3   :  { %336 = vrot.lane.b32.xlu0 %v1338_v0, %s1302_s22 }
  0xe4   :  { %v1647_v61 = vpop.permute.xlu2 %242  ;;  %v1649_v62 = vpop.permute.xlu1 %206 }
  0xe5   :  { %2592 = vst [vmem:[#allocation31_spill] sm:$0xff] %v1647_v61  ;;  %v1651_v63 = vpop.permute.xlu0 %204 }
  0xe6   :  { %2593 = vst [vmem:[#allocation32_spill] sm:$0xff] %v1649_v62 }
  0xea   :  { %346 = vrot.lane.b32.xlu2 %v1411_v11, %s1302_s22  ;;  %344 = vrot.lane.b32.xlu1 %v1380_v6, %s1302_s22 }
  0xeb   :  { %342 = vrot.lane.b32.xlu0 %v1385_v7, %s1302_s22 }
  0xec   :  { %v1659_v52 = vpop.permute.xlu2 %248  ;;  %v1661_v48 = vpop.permute.xlu1 %212 }
  0xed   :  { %2594 = vst [vmem:[#allocation33_spill] sm:$0xff] %v1659_v52  ;;  %v1663_v47 = vpop.permute.xlu0 %210 }
  0xf2   :  { %352 = vrot.lane.b32.xlu2 %v1432_v14, %s1302_s22  ;;  %350 = vrot.lane.b32.xlu1 %v1401_v9, %s1302_s22 }
  0xf3   :  { %348 = vrot.lane.b32.xlu0 %v1406_v10, %s1302_s22 }
  0xf4   :  { %v1671_v62 = vpop.permute.xlu2 %254  ;;  %v1673_v19 = vpop.permute.xlu1 %234 }
  0xf5   :  { %2595 = vst [vmem:[#allocation34_spill] sm:$0xff] %v1671_v62  ;;  %v1675_v33 = vpop.permute.xlu0 %232 }
  0xfa   :  { %358 = vrot.lane.b32.xlu2 %v1443_v15, %s1302_s22  ;;  %356 = vrot.lane.b32.xlu1 %v1422_v12, %s1302_s22 }
  0xfb   :  { %354 = vrot.lane.b32.xlu0 %v1427_v13, %s1302_s22 }
  0xfc   :  { %v1683_v52 = vpop.permute.xlu2 %260  ;;  %v1685_v59 = vpop.permute.xlu1 %240 }
  0xfd   :  { %v1687_v49 = vpop.permute.xlu0 %238 }
  0xfe   :  { %2596 = vst [vmem:[#allocation35_spill] sm:$0xff] %v1687_v49 }
 0x102   :  { %380 = vrot.lane.b32.xlu2 %v1343_v1, %s1303_s23  ;;  %378 = vrot.lane.b32.xlu1 %v1369_v5, %s1303_s23 }
 0x103   :  { %376 = vrot.lane.b32.xlu0 %v1348_v2, %s1303_s23 }
 0x104   :  { %v1695_v62 = vpop.permute.xlu2 %282  ;;  %v1697_v45 = vpop.permute.xlu1 %246 }
 0x105   :  { %v1699_v44 = vpop.permute.xlu0 %244 }
 0x106   :  { %2597 = vst [vmem:[#allocation36_spill] sm:$0xff] %v1699_v44 }
 0x10a   :  { %386 = vrot.lane.b32.xlu2 %v1359_v3, %s1303_s23  ;;  %384 = vrot.lane.b32.xlu1 %v1338_v0, %s1303_s23 }
 0x10b   :  { %382 = vrot.lane.b32.xlu0 %v1364_v4, %s1303_s23 }
 0x10c   :  { %v1707_v18 = vpop.permute.xlu2 %288  ;;  %v1709_v30 = vpop.permute.xlu1 %252 }
 0x10d   :  { %v1711_v61 = vpop.permute.xlu0 %250 }
 0x10e   :  { %2598 = vst [vmem:[#allocation37_spill] sm:$0xff] %v1711_v61 }
 0x112   :  { %392 = vrot.lane.b32.xlu2 %v1380_v6, %s1303_s23  ;;  %390 = vrot.lane.b32.xlu1 %v1385_v7, %s1303_s23 }
 0x113   :  { %388 = vrot.lane.b32.xlu0 %v1390_v8, %s1303_s23 }
 0x114   :  { %v1719_v44 = vpop.permute.xlu2 %294  ;;  %v1721_v56 = vpop.permute.xlu1 %258 }
 0x115   :  { %v1723_v46 = vpop.permute.xlu0 %256 }
 0x116   :  { %2599 = vst [vmem:[#allocation38_spill] sm:$0xff] %v1723_v46 }
 0x11a   :  { %398 = vrot.lane.b32.xlu2 %v1401_v9, %s1303_s23  ;;  %396 = vrot.lane.b32.xlu1 %v1406_v10, %s1303_s23 }
 0x11b   :  { %394 = vrot.lane.b32.xlu0 %v1411_v11, %s1303_s23 }
 0x11c   :  { %v1731_v61 = vpop.permute.xlu2 %300  ;;  %v1733_v42 = vpop.permute.xlu1 %280 }
 0x11d   :  { %v1735_v41 = vpop.permute.xlu0 %262 }
 0x122   :  { %404 = vrot.lane.b32.xlu2 %v1422_v12, %s1303_s23  ;;  %402 = vrot.lane.b32.xlu1 %v1427_v13, %s1303_s23 }
 0x123   :  { %400 = vrot.lane.b32.xlu0 %v1432_v14, %s1303_s23 }
 0x124   :  { %v1743_v46 = vpop.permute.xlu2 %306  ;;  %v1745_v17 = vpop.permute.xlu1 %286 }
 0x125   :  { %2600 = vst [vmem:[#allocation39_spill] sm:$0xff] %v1745_v17  ;;  %v1747_v27 = vpop.permute.xlu0 %284 }
 0x126   :  { %2601 = vst [vmem:[#allocation40_spill] sm:$0xff] %v1747_v27 }
 0x12a   :  { %426 = vrot.lane.b32.xlu2 %v1369_v5, %s1304_s24  ;;  %424 = vrot.lane.b32.xlu1 %v1348_v2, %s1304_s24 }
 0x12b   :  { %406 = vrot.lane.b32.xlu0 %v1443_v15, %s1303_s23 }
 0x12c   :  { %v1755_v58 = vpop.permute.xlu2 %328  ;;  %v1757_v49 = vpop.permute.xlu1 %292 }
 0x12d   :  { %2602 = vst [vmem:[#allocation41_spill] sm:$0xff] %v1755_v58  ;;  %v1759_v53 = vpop.permute.xlu0 %290 }
 0x12e   :  { %2603 = vst [vmem:[#allocation42_spill] sm:$0xff] %v1757_v49 }
 0x12f   :  { %2604 = vst [vmem:[#allocation43_spill] sm:$0xff] %v1759_v53 }
 0x132   :  { %432 = vrot.lane.b32.xlu2 %v1338_v0, %s1304_s24  ;;  %430 = vrot.lane.b32.xlu1 %v1364_v4, %s1304_s24 }
 0x133   :  { %428 = vrot.lane.b32.xlu0 %v1343_v1, %s1304_s24 }
 0x134   :  { %v1767_v27 = vpop.permute.xlu2 %334  ;;  %v1769_v17 = vpop.permute.xlu1 %298 }
 0x135   :  { %2605 = vst [vmem:[#allocation44_spill] sm:$0xff] %v1767_v27  ;;  %v1771_v43 = vpop.permute.xlu0 %296 }
 0x136   :  { %2606 = vst [vmem:[#allocation45_spill] sm:$0xff] %v1769_v17 }
 0x137   :  { %2607 = vst [vmem:[#allocation46_spill] sm:$0xff] %v1771_v43 }
 0x13a   :  { %438 = vrot.lane.b32.xlu2 %v1385_v7, %s1304_s24  ;;  %436 = vrot.lane.b32.xlu1 %v1390_v8, %s1304_s24 }
 0x13b   :  { %434 = vrot.lane.b32.xlu0 %v1359_v3, %s1304_s24 }
 0x13c   :  { %v1779_v53 = vpop.permute.xlu2 %340  ;;  %v1781_v49 = vpop.permute.xlu1 %304 }
 0x13d   :  { %2608 = vst [vmem:[#allocation47_spill] sm:$0xff] %v1779_v53  ;;  %v1783_v39 = vpop.permute.xlu0 %302 }
 0x13e   :  { %2609 = vst [vmem:[#allocation48_spill] sm:$0xff] %v1781_v49 }
 0x13f   :  { %2610 = vst [vmem:[#allocation49_spill] sm:$0xff] %v1783_v39 }
 0x142   :  { %444 = vrot.lane.b32.xlu2 %v1406_v10, %s1304_s24  ;;  %442 = vrot.lane.b32.xlu1 %v1411_v11, %s1304_s24 }
 0x143   :  { %440 = vrot.lane.b32.xlu0 %v1380_v6, %s1304_s24 }
 0x144   :  { %v1791_v43 = vpop.permute.xlu2 %346  ;;  %v1793_v17 = vpop.permute.xlu1 %310 }
 0x145   :  { %2611 = vst [vmem:[#allocation50_spill] sm:$0xff] %v1791_v43  ;;  %v309_v27 = vpop.permute.xlu0 %308 }
 0x146   :  { %2612 = vst [vmem:[#allocation51_spill] sm:$0xff] %v1793_v17 }
 0x14a   :  { %450 = vrot.lane.b32.xlu2 %v1427_v13, %s1304_s24  ;;  %448 = vrot.lane.b32.xlu1 %v1432_v14, %s1304_s24 }
 0x14b   :  { %446 = vrot.lane.b32.xlu0 %v1401_v9, %s1304_s24 }
 0x14c   :  { %v1801_v39 = vpop.permute.xlu2 %352  ;;  %v1803_v49 = vpop.permute.xlu1 %332 }
 0x14d   :  { %2613 = vst [vmem:[#allocation52_spill] sm:$0xff] %v1801_v39  ;;  %v331_v53 = vpop.permute.xlu0 %330 }
 0x14e   :  { %2614 = vst [vmem:[#allocation53_spill] sm:$0xff] %v1803_v49 }
 0x152   :  { %472 = vrot.lane.b32.xlu2 %v1348_v2, %s1305_s25  ;;  %454 = vrot.lane.b32.xlu1 %v1443_v15, %s1304_s24 }
 0x153   :  { %452 = vrot.lane.b32.xlu0 %v1422_v12, %s1304_s24 }
 0x154   :  { %v1811_v43 = vpop.permute.xlu2 %358  ;;  %v1813_v38 = vpop.permute.xlu1 %338 }
 0x155   :  { %2615 = vst [vmem:[#allocation54_spill] sm:$0xff] %v1811_v43  ;;  %v1815_v20 = vpop.permute.xlu0 %336 }
 0x156   :  { %2616 = vst [vmem:[#allocation55_spill] sm:$0xff] %v1813_v38 }
 0x15a   :  { %478 = vrot.lane.b32.xlu2 %v1364_v4, %s1305_s25  ;;  %476 = vrot.lane.b32.xlu1 %v1343_v1, %s1305_s25 }
 0x15b   :  { %474 = vrot.lane.b32.xlu0 %v1369_v5, %s1305_s25 }
 0x15c   :  { %v1823_v39 = vpop.permute.xlu2 %380  ;;  %v1825_v49 = vpop.permute.xlu1 %344 }
 0x15d   :  { %2617 = vst [vmem:[#allocation56_spill] sm:$0xff] %v1823_v39  ;;  %v1827_v23 = vpop.permute.xlu0 %342 }
 0x15e   :  { %2618 = vst [vmem:[#allocation57_spill] sm:$0xff] %v1825_v49 }
 0x162   :  { %484 = vrot.lane.b32.xlu2 %v1390_v8, %s1305_s25  ;;  %482 = vrot.lane.b32.xlu1 %v1359_v3, %s1305_s25 }
 0x163   :  { %480 = vrot.lane.b32.xlu0 %v1338_v0, %s1305_s25 }
 0x164   :  { %v1835_v38 = vpop.permute.xlu2 %386  ;;  %v1837_v43 = vpop.permute.xlu1 %350 }
 0x165   :  { %2619 = vst [vmem:[#allocation58_spill] sm:$0xff] %v1835_v38  ;;  %v1839_v17 = vpop.permute.xlu0 %348 }
 0x166   :  { %2620 = vst [vmem:[#allocation59_spill] sm:$0xff] %v1837_v43 }
 0x167   :  { %2621 = vst [vmem:[#allocation60_spill] sm:$0xff] %v1839_v17 }
 0x16a   :  { %490 = vrot.lane.b32.xlu2 %v1411_v11, %s1305_s25  ;;  %488 = vrot.lane.b32.xlu1 %v1380_v6, %s1305_s25 }
 0x16b   :  { %486 = vrot.lane.b32.xlu0 %v1385_v7, %s1305_s25 }
 0x16c   :  { %v1847_v49 = vpop.permute.xlu2 %392  ;;  %v357_v39 = vpop.permute.xlu1 %356 }
 0x16d   :  { %2622 = vst [vmem:[#allocation61_spill] sm:$0xff] %v1847_v49  ;;  %v1849_v58 = vpop.permute.xlu0 %354  ;;  %v823_v49 = vsel %vm808_vm0, %v1422_v12, %v1491_v22 }
 0x172   :  { %496 = vrot.lane.b32.xlu2 %v1432_v14, %s1305_s25  ;;  %494 = vrot.lane.b32.xlu1 %v1401_v9, %s1305_s25  ;;  %v840_v14 = vsel %vm825_vm1, %v823_v49, %v1603_v51 }
 0x173   :  { %492 = vrot.lane.b32.xlu0 %v1406_v10, %s1305_s25  ;;  %v857_v17 = vsel %vm842_vm2, %v840_v14, %v1661_v48 }
 0x174   :  { %v1857_v43 = vpop.permute.xlu2 %398  ;;  %v379_v38 = vpop.permute.xlu1 %378 }
 0x175   :  { %2623 = vst [vmem:[#allocation62_spill] sm:$0xff] %v1857_v43  ;;  %v1859_v11 = vpop.permute.xlu0 %376  ;;  %v874_v43 = vsel %vm859_vm3, %v857_v17, %v1683_v52  ;;  %v810_v52 = vsel %vm808_vm0, %v1369_v5, %v1495_v24 }
 0x176   :  { %v891_v22 = vsel %vm876_vm4, %v874_v43, %v309_v27  ;;  %v827_v27 = vsel %vm825_vm1, %v810_v52, %v1505_v26 }
 0x177   :  { %v908_v49 = vsel %vm893_vm5, %v891_v22, %v357_v39  ;;  %v844_v43 = vsel %vm842_vm2, %v827_v27, %v1615_v54 }
 0x178   :  { %v861_v39 = vsel %vm859_vm3, %v844_v43, %v1673_v19 }
 0x179   :  { %v878_v22 = vsel %vm876_vm4, %v861_v39, %v1695_v62  ;;  %v816_v39 = vsel %vm808_vm0, %v1385_v7, %v1503_v25 }
 0x17a   :  { %502 = vrot.lane.b32.xlu2 %v1443_v15, %s1305_s25  ;;  %500 = vrot.lane.b32.xlu1 %v1422_v12, %s1305_s25  ;;  %v895_v24 = vsel %vm893_vm5, %v878_v22, %v331_v53  ;;  %v833_v22 = vsel %vm825_vm1, %v816_v39, %v1529_v32 }
 0x17b   :  { %498 = vrot.lane.b32.xlu0 %v1427_v13, %s1305_s25  ;;  %v912_v26 = vsel %vm910_vm6, %v895_v24, %v379_v38  ;;  %v850_v24 = vsel %vm842_vm2, %v833_v22, %v1639_v60 }
 0x17c   :  { %v405_v14 = vpop.permute.xlu2 %404  ;;  %v385_v48 = vpop.permute.xlu1 %384 }
 0x17d   :  { %v1879_v17 = vsel %vm910_vm6, %v908_v49, %v405_v14  ;;  %v1881_v51 = vpop.permute.xlu0 %382  ;;  %v813_v14 = vsel %vm808_vm0, %v1338_v0, %v1467_v16 }
 0x17e   :  { %v830_v52 = vsel %vm825_vm1, %v813_v14, %v1517_v29 }
 0x17f   :  { %v847_v53 = vsel %vm842_vm2, %v830_v52, %v1627_v57  ;;  %v824_v52 = vsel %vm808_vm0, %v1443_v15, %v1543_v36 }
 0x180   :  { %v864_v38 = vsel %vm859_vm3, %v847_v53, %v1685_v59 }
 0x181   :  { %v881_v27 = vsel %vm876_vm4, %v864_v38, %v1707_v18  ;;  %v841_v38 = vsel %vm825_vm1, %v824_v52, %v1601_v50  ;;  %v2624_v50 = vld [vmem:[#allocation41_spill] sm:$0xff] }
 0x182   :  { %524 = vrot.lane.b32.xlu2 %v1343_v1, %s1306_s26  ;;  %522 = vrot.lane.b32.xlu1 %v1369_v5, %s1306_s26  ;;  %v898_v16 = vsel %vm893_vm5, %v881_v27, %v1815_v20  ;;  %v822_v20 = vsel %vm808_vm0, %v1427_v13, %v1527_v31  ;;  %v2627_v27 = vld [vmem:[#allocation51_spill] sm:$0xff] }
 0x183   :  { %520 = vrot.lane.b32.xlu0 %v1348_v2, %s1306_s26  ;;  %v915_v29 = vsel %vm910_vm6, %v898_v16, %v385_v48  ;;  %v839_v48 = vsel %vm825_vm1, %v822_v20, %v1551_v37 }
 0x184   :  { %v427_v54 = vpop.permute.xlu2 %426  ;;  %v391_v19 = vpop.permute.xlu1 %390 }
 0x185   :  { %v1903_v49 = vsel %vm927_vm7, %v912_v26, %v427_v54  ;;  %v1905_v62 = vpop.permute.xlu0 %388  ;;  %v856_v26 = vsel %vm842_vm2, %v839_v48, %v1663_v47  ;;  %v867_v54 = vsel %vm859_vm3, %v850_v24, %v1697_v45 }
 0x186   :  { %v884_v25 = vsel %vm876_vm4, %v867_v54, %v1719_v44  ;;  %v873_v31 = vsel %vm859_vm3, %v856_v26, %v1721_v56  ;;  %v2629_v26 = vld [vmem:[#allocation11_spill] sm:$0xff] }
 0x187   :  { %v890_v32 = vsel %vm876_vm4, %v873_v31, %v1743_v46  ;;  %v901_v37 = vsel %vm893_vm5, %v884_v25, %v1827_v23  ;;  %v809_v23 = vsel %vm808_vm0, %v1348_v2, %v1486_v21  ;;  %v819_v46 = vsel %vm808_vm0, %v1406_v10, %v1515_v28  ;;  %v2631_v31 = vld [vmem:[#allocation15_spill] sm:$0xff] }
 0x188   :  { %v907_v44 = vsel %vm893_vm5, %v890_v32, %v1849_v58  ;;  %v918_v45 = vsel %vm910_vm6, %v901_v37, %v391_v19  ;;  %v836_v58 = vsel %vm825_vm1, %v819_v46, %v1539_v34  ;;  %v826_v19 = vsel %vm825_vm1, %v809_v23, %v1541_v35  ;;  %v2632_v37 = vld [vmem:[#allocation16_spill] sm:$0xff]  ;;  %v2635_v46 = vld [vmem:[#allocation35_spill] sm:$0xff] }
 0x189   :  { %v843_v53 = vsel %vm842_vm2, %v826_v19, %v1563_v40  ;;  %v853_v21 = vsel %vm842_vm2, %v836_v58, %v1651_v63  ;;  %v858_v35 = vsel %vm842_vm2, %v841_v38, %v1623_v55  ;;  %v2625_v63 = vld [vmem:[#allocation60_spill] sm:$0xff]  ;;  %v812_v54 = vsel %vm808_vm0, %v1364_v4, %v2629_v26  ;;  %v2636_v19 = vld [vmem:[#allocation29_spill] sm:$0xff] }
 0x18a   :  { %530 = vrot.lane.b32.xlu2 %v1359_v3, %s1306_s26  ;;  %528 = vrot.lane.b32.xlu1 %v1338_v0, %s1306_s26  ;;  %v860_v28 = vsel %vm859_vm3, %v843_v53, %v1675_v33  ;;  %v870_v34 = vsel %vm859_vm3, %v853_v21, %v1709_v30  ;;  %v875_v33 = vsel %vm859_vm3, %v858_v35, %v1735_v41  ;;  %v2628_v41 = vld [vmem:[#allocation54_spill] sm:$0xff]  ;;  %v2637_v53 = vld [vmem:[#allocation39_spill] sm:$0xff]  ;;  %v2638_v38 = vld [vmem:[#allocation40_spill] sm:$0xff] }
 0x18b   :  { %526 = vrot.lane.b32.xlu0 %v1364_v4, %s1306_s26  ;;  %v887_v36 = vsel %vm876_vm4, %v870_v34, %v1731_v61  ;;  %v877_v40 = vsel %vm876_vm4, %v860_v28, %v1733_v42  ;;  %v2626_v61 = vld [vmem:[#allocation5_spill] sm:$0xff]  ;;  %v892_v42 = vsel %vm876_vm4, %v875_v33, %v2627_v27  ;;  %v829_v32 = vsel %vm825_vm1, %v812_v54, %v2631_v31  ;;  %v2639_v34 = vld [vmem:[#allocation44_spill] sm:$0xff]  ;;  %v2646_v54 = vld [vmem:[#allocation18_spill] sm:$0xff] }
 0x18c   :  { %v433_v57 = vpop.permute.xlu2 %432  ;;  %v397_v43 = vpop.permute.xlu1 %396  ;;  %v894_v30 = vsel %vm893_vm5, %v877_v40, %v2624_v50  ;;  %v904_v55 = vsel %vm893_vm5, %v887_v36, %v2625_v63  ;;  %v909_v20 = vsel %vm893_vm5, %v892_v42, %v2628_v41  ;;  %v2640_v36 = vld [vmem:[#allocation6_spill] sm:$0xff]  ;;  %v2641_v40 = vld [vmem:[#allocation53_spill] sm:$0xff]  ;;  %v2648_v31 = vld [vmem:[#allocation28_spill] sm:$0xff] }
 0x18d   :  { %v1928_v59 = vsel %vm927_vm7, %v915_v29, %v433_v57  ;;  %v1930_v18 = vpop.permute.xlu0 %394  ;;  %v911_v16 = vsel %vm910_vm6, %v894_v30, %v1859_v11  ;;  %v921_v29 = vsel %vm910_vm6, %v904_v55, %v397_v43  ;;  %v2630_v11 = vld [vmem:[#allocation10_spill] sm:$0xff]  ;;  %v2642_v55 = vld [vmem:[#allocation56_spill] sm:$0xff] }
 0x18e   :  { %v811_v43 = vsel %vm808_vm0, %v1343_v1, %v2630_v11  ;;  %v2647_v11 = vld [vmem:[#allocation22_spill] sm:$0xff] }
 0x192   :  { %536 = vrot.lane.b32.xlu2 %v1380_v6, %s1306_s26  ;;  %534 = vrot.lane.b32.xlu1 %v1385_v7, %s1306_s26 }
 0x193   :  { %532 = vrot.lane.b32.xlu0 %v1390_v8, %s1306_s26 }
 0x194   :  { %v439_v47 = vpop.permute.xlu2 %438  ;;  %v403_v56 = vpop.permute.xlu1 %402 }
 0x195   :  { %v1966_v60 = vsel %vm927_vm7, %v918_v45, %v439_v47  ;;  %v924_v7 = vsel %vm910_vm6, %v907_v44, %v403_v56  ;;  %v1969_v14 = vpop.permute.xlu0 %400  ;;  %v828_v44 = vsel %vm825_vm1, %v811_v43, %v2632_v37  ;;  %v2633_v45 = vld [vmem:[#allocation19_spill] sm:$0xff] }
 0x196   :  { %v846_v47 = vsel %vm842_vm2, %v829_v32, %v2633_v45  ;;  %v2634_v56 = vld [vmem:[#allocation27_spill] sm:$0xff] }
 0x197   :  { %v845_v23 = vsel %vm842_vm2, %v828_v44, %v2634_v56  ;;  %v863_v58 = vsel %vm859_vm3, %v846_v47, %v2635_v46  ;;  %v2650_v44 = vld [vmem:[#allocation31_spill] sm:$0xff]  ;;  %v2651_v47 = vld [vmem:[#allocation42_spill] sm:$0xff] }
 0x198   :  { %v862_v52 = vsel %vm859_vm3, %v845_v23, %v2636_v19  ;;  %v880_v21 = vsel %vm876_vm4, %v863_v58, %v2637_v53  ;;  %v2652_v56 = vld [vmem:[#allocation43_spill] sm:$0xff] }
 0x199   :  { %v879_v28 = vsel %vm876_vm4, %v862_v52, %v2638_v38  ;;  %v897_v35 = vsel %vm893_vm5, %v880_v21, %v2639_v34  ;;  %v2653_v46 = vld [vmem:[#allocation47_spill] sm:$0xff]  ;;  %v2655_v38 = vld [vmem:[#allocation58_spill] sm:$0xff] }
 0x19a   :  { %542 = vrot.lane.b32.xlu2 %v1401_v9, %s1306_s26  ;;  %540 = vrot.lane.b32.xlu1 %v1406_v10, %s1306_s26  ;;  %v896_v33 = vsel %vm893_vm5, %v879_v28, %v2641_v40  ;;  %v914_v50 = vsel %vm910_vm6, %v897_v35, %v1881_v51  ;;  %v2654_v19 = vld [vmem:[#allocation55_spill] sm:$0xff]  ;;  %v2656_v40 = vld [vmem:[#allocation13_spill] sm:$0xff] }
 0x19b   :  { %538 = vrot.lane.b32.xlu0 %v2626_v61, %s1306_s26  ;;  %v913_v27 = vsel %vm910_vm6, %v896_v33, %v2642_v55  ;;  %v818_v33 = vsel %vm808_vm0, %v2626_v61, %v2656_v40  ;;  %v2662_v61 = vld [vmem:[#allocation37_spill] sm:$0xff] }
 0x19c   :  { %v445_v57 = vpop.permute.xlu2 %444  ;;  %v425_v39 = vpop.permute.xlu1 %424 }
 0x19d   :  { %v2020_v22 = vsel %vm927_vm7, %v921_v29, %v445_v57  ;;  %v928_v48 = vsel %vm927_vm7, %v911_v16, %v425_v39  ;;  %v407_v24 = vpop.permute.xlu0 %406  ;;  %v2643_v57 = vld [vmem:[#allocation12_spill] sm:$0xff] }
 0x19e   :  { %v2027_v25 = vsel %vm910_vm6, %v909_v20, %v407_v24  ;;  %v815_v39 = vsel %vm808_vm0, %v1390_v8, %v2643_v57  ;;  %v2644_v20 = vld [vmem:[#allocation7_spill] sm:$0xff]  ;;  %v2645_v24 = vld [vmem:[#allocation17_spill] sm:$0xff]  ;;  %v2649_v8 = vld [vmem:[#allocation36_spill] sm:$0xff] }
 0x19f   :  { %v814_v51 = vsel %vm808_vm0, %v1359_v3, %v2644_v20  ;;  %v832_v26 = vsel %vm825_vm1, %v815_v39, %v2645_v24  ;;  %v2661_v39 = vld [vmem:[#allocation30_spill] sm:$0xff]  ;;  %v2663_v24 = vld [vmem:[#allocation33_spill] sm:$0xff] }
 0x1a0   :  { %v849_v43 = vsel %vm842_vm2, %v832_v26, %v2647_v11 }
 0x1a1   :  { %v866_v37 = vsel %vm859_vm3, %v849_v43, %v2649_v8  ;;  %v2666_v43 = vld [vmem:[#allocation50_spill] sm:$0xff] }
 0x1a2   :  { %548 = vrot.lane.b32.xlu2 %v1422_v12, %s1306_s26  ;;  %546 = vrot.lane.b32.xlu1 %v1427_v13, %s1306_s26  ;;  %v883_v3 = vsel %vm876_vm4, %v866_v37, %v2651_v47 }
 0x1a3   :  { %544 = vrot.lane.b32.xlu0 %v2640_v36, %s1306_s26  ;;  %v900_v58 = vsel %vm893_vm5, %v883_v3, %v2653_v46 }
 0x1a4   :  { %v451_v30 = vpop.permute.xlu2 %450  ;;  %v431_v63 = vpop.permute.xlu1 %430  ;;  %v917_v53 = vsel %vm910_vm6, %v900_v58, %v1905_v62  ;;  %v2670_v58 = vld [vmem:[#allocation9_spill] sm:$0xff] }
 0x1a5   :  { %v2063_v42 = vsel %vm927_vm7, %v924_v7, %v451_v30  ;;  %v931_v16 = vsel %vm927_vm7, %v914_v50, %v431_v63  ;;  %v429_v29 = vpop.permute.xlu0 %428  ;;  %v831_v7 = vsel %vm825_vm1, %v814_v51, %v2646_v54  ;;  %v2657_v30 = vld [vmem:[#allocation8_spill] sm:$0xff]  ;;  %v2664_v54 = vld [vmem:[#allocation45_spill] sm:$0xff] }
 0x1a6   :  { %v2070_v41 = vsel %vm927_vm7, %v913_v27, %v429_v29  ;;  %v848_v32 = vsel %vm842_vm2, %v831_v7, %v2648_v31  ;;  %v817_v62 = vsel %vm808_vm0, %v1380_v6, %v2657_v30  ;;  %v2658_v63 = vld [vmem:[#allocation20_spill] sm:$0xff]  ;;  %v2659_v27 = vld [vmem:[#allocation21_spill] sm:$0xff]  ;;  %v2665_v7 = vld [vmem:[#allocation46_spill] sm:$0xff] }
 0x1a7   :  { %v865_v45 = vsel %vm859_vm3, %v848_v32, %v2650_v44  ;;  %v835_v55 = vsel %vm825_vm1, %v818_v33, %v2658_v63  ;;  %v2660_v29 = vld [vmem:[#allocation25_spill] sm:$0xff]  ;;  %v2676_v33 = vld [vmem:[#allocation34_spill] sm:$0xff] }
 0x1a8   :  { %v882_v23 = vsel %vm876_vm4, %v865_v45, %v2652_v56  ;;  %v852_v57 = vsel %vm842_vm2, %v835_v55, %v2660_v29  ;;  %v2667_v32 = vld [vmem:[#allocation57_spill] sm:$0xff] }
 0x1a9   :  { %v899_v52 = vsel %vm893_vm5, %v882_v23, %v2654_v19  ;;  %v869_v51 = vsel %vm859_vm3, %v852_v57, %v2662_v61  ;;  %v2668_v45 = vld [vmem:[#allocation61_spill] sm:$0xff]  ;;  %v2669_v23 = vld [vmem:[#allocation14_spill] sm:$0xff]  ;;  %v2671_v19 = vld [vmem:[#allocation23_spill] sm:$0xff] }
 0x1aa   :  { %570 = vrot.lane.b32.xlu2 %v1369_v5, %s1307_s27  ;;  %568 = vrot.lane.b32.xlu1 %v1348_v2, %s1307_s27  ;;  %v916_v2 = vsel %vm910_vm6, %v899_v52, %v2655_v38  ;;  %v886_v6 = vsel %vm876_vm4, %v869_v51, %v2664_v54  ;;  %v2674_v38 = vld [vmem:[#allocation32_spill] sm:$0xff]  ;;  %v2678_v55 = vld [vmem:[#allocation49_spill] sm:$0xff]  ;;  %v2680_v57 = vld [vmem:[#allocation59_spill] sm:$0xff] }
 0x1ab   :  { %550 = vrot.lane.b32.xlu0 %v1443_v15, %s1306_s26  ;;  %v903_v31 = vsel %vm893_vm5, %v886_v6, %v2666_v43 }
 0x1ac   :  { %v473_v5 = vpop.permute.xlu2 %472  ;;  %v437_v21 = vpop.permute.xlu1 %436  ;;  %v920_v37 = vsel %vm910_vm6, %v903_v31, %v1930_v18  ;;  %v820_v18 = vsel %vm808_vm0, %v1401_v9, %v2670_v58 }
 0x1ad   :  { %v2106_v28 = vsel %vm944_vm8, %v928_v48, %v473_v5  ;;  %v934_v34 = vsel %vm927_vm7, %v917_v53, %v437_v21  ;;  %v435_v35 = vpop.permute.xlu0 %434  ;;  %v834_v48 = vsel %vm825_vm1, %v817_v62, %v2659_v27  ;;  %v2672_v53 = vld [vmem:[#allocation24_spill] sm:$0xff]  ;;  %v2673_v5 = vld [vmem:[#allocation26_spill] sm:$0xff] }
 0x1ae   :  { %v2113_v50 = vsel %vm927_vm7, %v916_v2, %v435_v35  ;;  %v851_v20 = vsel %vm842_vm2, %v834_v48, %v2661_v39  ;;  %v2675_v35 = vld [vmem:[#allocation38_spill] sm:$0xff]  ;;  %v2677_v62 = vld [vmem:[#allocation48_spill] sm:$0xff] }
 0x1af   :  { %v868_v26 = vsel %vm859_vm3, %v851_v20, %v2663_v24  ;;  %v2679_v48 = vld [vmem:[#allocation52_spill] sm:$0xff]  ;;  %v2681_v24 = vld [vmem:[#allocation62_spill] sm:$0xff] }
 0x1b0   :  { %v885_v11 = vsel %vm876_vm4, %v868_v26, %v2665_v7 }
 0x1b1   :  { %v902_v8 = vsel %vm893_vm5, %v885_v11, %v2667_v32 }
 0x1b2   :  { %576 = vrot.lane.b32.xlu2 %v1338_v0, %s1307_s27  ;;  %574 = vrot.lane.b32.xlu1 %v1364_v4, %s1307_s27  ;;  %v919_v4 = vsel %vm910_vm6, %v902_v8, %v2668_v45 }
 0x1b3   :  { %572 = vrot.lane.b32.xlu0 %v1343_v1, %s1307_s27  ;;  %v821_v1 = vsel %vm808_vm0, %v2640_v36, %v2669_v23 }
 0x1b4   :  { %v479_v44 = vpop.permute.xlu2 %478  ;;  %v443_v0 = vpop.permute.xlu1 %442  ;;  %v838_v52 = vsel %vm825_vm1, %v821_v1, %v2671_v19 }
 0x1b5   :  { %v2149_v47 = vsel %vm944_vm8, %v931_v16, %v479_v44  ;;  %v937_v3 = vsel %vm927_vm7, %v920_v37, %v443_v0  ;;  %v441_v56 = vpop.permute.xlu0 %440  ;;  %v837_v16 = vsel %vm825_vm1, %v820_v18, %v2672_v53  ;;  %v855_v21 = vsel %vm842_vm2, %v838_v52, %v2673_v5 }
 0x1b6   :  { %v936_v46 = vsel %vm927_vm7, %v919_v4, %v441_v56  ;;  %v854_v2 = vsel %vm842_vm2, %v837_v16, %v2674_v38  ;;  %v872_v40 = vsel %vm859_vm3, %v855_v21, %v2675_v35 }
 0x1b7   :  { %v871_v30 = vsel %vm859_vm3, %v854_v2, %v2676_v33  ;;  %v889_v63 = vsel %vm876_vm4, %v872_v40, %v2677_v62 }
 0x1b8   :  { %v888_v27 = vsel %vm876_vm4, %v871_v30, %v2678_v55  ;;  %v906_v29 = vsel %vm893_vm5, %v889_v63, %v2679_v48  ;;  %v1262_v48 = vld [vmem:[%s2559_s1 + $0x40] sm:$0xff] }
 0x1b9   :  { %v905_v39 = vsel %vm893_vm5, %v888_v27, %v2680_v57  ;;  %v923_v20 = vsel %vm910_vm6, %v906_v29, %v1969_v14  ;;  %v1261_v27 = vld [vmem:[%s2559_s1 + $0x48] sm:$0xff] }
 0x1ba   :  { %644 = vrot.lane.b32.xlu2 %v1422_v12, %s1308_s28  ;;  %598 = vrot.lane.b32.xlu1 %v1443_v15, %s1307_s27  ;;  %v922_v26 = vsel %vm910_vm6, %v905_v39, %v2681_v24 }
 0x1bb   :  { %596 = vrot.lane.b32.xlu0 %v1422_v12, %s1307_s27 }
 0x1bc   :  { %v485_v61 = vpop.permute.xlu2 %484  ;;  %v449_v51 = vpop.permute.xlu1 %448 }
 0x1bd   :  { %v2190_v54 = vsel %vm944_vm8, %v934_v34, %v485_v61  ;;  %v940_v6 = vsel %vm927_vm7, %v923_v20, %v449_v51  ;;  %v447_v7 = vpop.permute.xlu0 %446 }
 0x1be   :  { %v939_v11 = vsel %vm927_vm7, %v922_v26, %v447_v7 }
 0x1c2   :  { %694 = vrot.lane.b32.xlu2 %v1443_v15, %s1309_s29  ;;  %692 = vrot.lane.b32.xlu1 %v1422_v12, %s1309_s29 }
 0x1c3   :  { %646 = vrot.lane.b32.xlu0 %v1443_v15, %s1308_s28 }
 0x1c4   :  { %v491_v14 = vpop.permute.xlu2 %490  ;;  %v455_v43 = vpop.permute.xlu1 %454 }
 0x1c5   :  { %v2201_v34 = vsel %vm944_vm8, %v937_v3, %v491_v14  ;;  %v943_v31 = vsel %vm927_vm7, %v2027_v25, %v455_v43  ;;  %v453_v32 = vpop.permute.xlu0 %452 }
 0x1c6   :  { %v942_v8 = vsel %vm927_vm7, %v1879_v17, %v453_v32 }
 0x1ca   :  { %592 = vrot.lane.b32.xlu2 %v2640_v36, %s1307_s27  ;;  %742 = vrot.lane.b32.xlu1 %v1443_v15, %s1310_s30 }
 0x1cb   :  { %740 = vrot.lane.b32.xlu0 %v1422_v12, %s1310_s30 }
 0x1cc   :  { %v497_v37 = vpop.permute.xlu2 %496  ;;  %v477_v44 = vpop.permute.xlu1 %476 }
 0x1cd   :  { %v2214_v0 = vsel %vm944_vm8, %v940_v6, %v497_v37  ;;  %v947_v25 = vsel %vm944_vm8, %v2070_v41, %v477_v44  ;;  %v475_v45 = vpop.permute.xlu0 %474 }
 0x1ce   :  { %v946_v17 = vsel %vm944_vm8, %v1903_v49, %v475_v45 }
 0x1d2   :  { %790 = vrot.lane.b32.xlu2 %v1443_v15, %s1311_s4  ;;  %788 = vrot.lane.b32.xlu1 %v1422_v12, %s1311_s4 }
 0x1d3   :  { %594 = vrot.lane.b32.xlu0 %v1427_v13, %s1307_s27 }
 0x1d4   :  { %v503_v4 = vpop.permute.xlu2 %502  ;;  %v483_v3 = vpop.permute.xlu1 %482 }
 0x1d5   :  { %v2227_v56 = vsel %vm944_vm8, %v943_v31, %v503_v4  ;;  %v950_v41 = vsel %vm944_vm8, %v2113_v50, %v483_v3  ;;  %v481_v23 = vpop.permute.xlu0 %480 }
 0x1d6   :  { %v949_v49 = vsel %vm944_vm8, %v1928_v59, %v481_v23 }
 0x1da   :  { %688 = vrot.lane.b32.xlu2 %v2640_v36, %s1309_s29  ;;  %642 = vrot.lane.b32.xlu1 %v1427_v13, %s1308_s28 }
 0x1db   :  { %640 = vrot.lane.b32.xlu0 %v2640_v36, %s1308_s28 }
 0x1dc   :  { %v525_v12 = vpop.permute.xlu2 %524  ;;  %v489_v15 = vpop.permute.xlu1 %488 }
 0x1dd   :  { %v2240_v1 = vsel %vm961_vm9, %v947_v25, %v525_v12  ;;  %v953_v50 = vsel %vm944_vm8, %v936_v46, %v489_v15  ;;  %v487_v58 = vpop.permute.xlu0 %486 }
 0x1de   :  { %v952_v59 = vsel %vm944_vm8, %v1966_v60, %v487_v58 }
 0x1e2   :  { %738 = vrot.lane.b32.xlu2 %v1427_v13, %s1310_s30  ;;  %736 = vrot.lane.b32.xlu1 %v2640_v36, %s1310_s30 }
 0x1e3   :  { %690 = vrot.lane.b32.xlu0 %v1427_v13, %s1309_s29 }
 0x1e4   :  { %v531_v18 = vpop.permute.xlu2 %530  ;;  %v495_v19 = vpop.permute.xlu1 %494 }
 0x1e5   :  { %v2252_v52 = vsel %vm961_vm9, %v950_v41, %v531_v18  ;;  %v956_v46 = vsel %vm944_vm8, %v939_v11, %v495_v19  ;;  %v493_v53 = vpop.permute.xlu0 %492  ;;  %v1265_v19 = vld [vmem:[%s2559_s1 + $0x28] sm:$0xff] }
 0x1e6   :  { %v955_v60 = vsel %vm944_vm8, %v2020_v22, %v493_v53 }
 0x1ea   :  { %784 = vrot.lane.b32.xlu2 %v2640_v36, %s1311_s4  ;;  %590 = vrot.lane.b32.xlu1 %v1401_v9, %s1307_s27 }
 0x1eb   :  { %588 = vrot.lane.b32.xlu0 %v1406_v10, %s1307_s27 }
 0x1ec   :  { %v537_v16 = vpop.permute.xlu2 %536  ;;  %v501_v5 = vpop.permute.xlu1 %500 }
 0x1ed   :  { %v2264_v21 = vsel %vm961_vm9, %v953_v50, %v537_v16  ;;  %v2267_v38 = vsel %vm944_vm8, %v942_v8, %v501_v5  ;;  %v499_v2 = vpop.permute.xlu0 %498 }
 0x1ee   :  { %v958_v22 = vsel %vm944_vm8, %v2063_v42, %v499_v2 }
 0x1f2   :  { %638 = vrot.lane.b32.xlu2 %v1401_v9, %s1308_s28  ;;  %636 = vrot.lane.b32.xlu1 %v1406_v10, %s1308_s28  ;;  %v1259_v9 = vld [vmem:[%s2559_s1 + $0x58] sm:$0xff] }
 0x1f3   :  { %786 = vrot.lane.b32.xlu0 %v1427_v13, %s1311_s4  ;;  %v1260_v13 = vld [vmem:[%s2559_s1 + $0x50] sm:$0xff] }
 0x1f4   :  { %v543_v36 = vpop.permute.xlu2 %542  ;;  %v523_v35 = vpop.permute.xlu1 %522 }
 0x1f5   :  { %v2278_v40 = vsel %vm961_vm9, %v956_v46, %v543_v36  ;;  %v963_v33 = vsel %vm961_vm9, %v946_v17, %v523_v35  ;;  %v521_v30 = vpop.permute.xlu0 %520 }
 0x1f6   :  { %v962_v42 = vsel %vm961_vm9, %v2106_v28, %v521_v30  ;;  %v1266_v30 = vld [vmem:[%s2559_s1 + $0x20] sm:$0xff] }
 0x1fa   :  { %732 = vrot.lane.b32.xlu2 %v1406_v10, %s1310_s30  ;;  %686 = vrot.lane.b32.xlu1 %v1259_v9, %s1309_s29 }
 0x1fb   :  { %684 = vrot.lane.b32.xlu0 %v1260_v13, %s1309_s29 }
 0x1fc   :  { %v2293_v62 = vpop.permute.xlu2 %548  ;;  %v529_v63 = vpop.permute.xlu1 %528 }
 0x1fd   :  { %v966_v28 = vsel %vm961_vm9, %v949_v49, %v529_v63  ;;  %v527_v55 = vpop.permute.xlu0 %526  ;;  %v976_v2 = vsel %vm961_vm9, %v2267_v38, %v2293_v62 }
 0x1fe   :  { %v965_v10 = vsel %vm961_vm9, %v2149_v47, %v527_v55 }
 0x202   :  { %586 = vrot.lane.b32.xlu2 %v1261_v27, %s1307_s27  ;;  %584 = vrot.lane.b32.xlu1 %v1262_v48, %s1307_s27 }
 0x203   :  { %734 = vrot.lane.b32.xlu0 %v1259_v9, %s1310_s30 }
 0x204   :  { %v571_v29 = vpop.permute.xlu2 %570  ;;  %v535_v57 = vpop.permute.xlu1 %534 }
 0x205   :  { %v2308_v39 = vsel %vm978_vm10, %v963_v33, %v571_v29  ;;  %v2311_v47 = vsel %vm961_vm9, %v952_v59, %v535_v57  ;;  %v533_v20 = vpop.permute.xlu0 %532 }
 0x206   :  { %v2315_v61 = vsel %vm961_vm9, %v2190_v54, %v533_v20 }
 0x20a   :  { %632 = vrot.lane.b32.xlu2 %v1262_v48, %s1308_s28  ;;  %782 = vrot.lane.b32.xlu1 %v1259_v9, %s1311_s4 }
 0x20b   :  { %780 = vrot.lane.b32.xlu0 %v1260_v13, %s1311_s4 }
 0x20c   :  { %v577_v51 = vpop.permute.xlu2 %576  ;;  %v541_v24 = vpop.permute.xlu1 %540 }
 0x20d   :  { %v2321_v26 = vsel %vm978_vm10, %v966_v28, %v577_v51  ;;  %v2324_v6 = vsel %vm961_vm9, %v955_v60, %v541_v24  ;;  %v539_v7 = vpop.permute.xlu0 %538 }
 0x20e   :  { %v2328_v11 = vsel %vm961_vm9, %v2201_v34, %v539_v7  ;;  %v1263_v34 = vld [vmem:[%s2559_s1 + $0x30] sm:$0xff] }
 0x20f   :  { %v1267_v7 = vld [vmem:[%s2559_s1 + $0x10] sm:$0xff] }
 0x212   :  { %682 = vrot.lane.b32.xlu2 %v1261_v27, %s1309_s29  ;;  %680 = vrot.lane.b32.xlu1 %v1262_v48, %s1309_s29 }
 0x213   :  { %634 = vrot.lane.b32.xlu0 %v1261_v27, %s1308_s28 }
 0x214   :  { %v645_v54 = vpop.permute.xlu2 %644  ;;  %v547_v14 = vpop.permute.xlu1 %546 }
 0x215   :  { %v2334_v43 = vsel %vm961_vm9, %v958_v22, %v547_v14  ;;  %v545_v31 = vpop.permute.xlu0 %544 }
 0x216   :  { %v2338_v32 = vsel %vm961_vm9, %v2214_v0, %v545_v31  ;;  %v1264_v0 = vld [vmem:[%s2559_s1 + $0x38] sm:$0xff] }
 0x21a   :  { %580 = vrot.lane.b32.xlu2 %v1263_v34, %s1307_s27  ;;  %730 = vrot.lane.b32.xlu1 %v1261_v27, %s1310_s30 }
 0x21b   :  { %728 = vrot.lane.b32.xlu0 %v1262_v48, %s1310_s30 }
 0x21c   :  { %v695_v8 = vpop.permute.xlu2 %694  ;;  %v569_v37 = vpop.permute.xlu1 %568 }
 0x21d   :  { %v2347_v44 = vsel %vm978_vm10, %v962_v42, %v569_v37  ;;  %v551_v25 = vpop.permute.xlu0 %550 }
 0x21e   :  { %v977_v58 = vsel %vm961_vm9, %v2227_v56, %v551_v25  ;;  %v2385_v56 = vld [vmem:[%s2558_s0] ss:$0 sm:$0xff] }
 0x222   :  { %778 = vrot.lane.b32.xlu2 %v1261_v27, %s1311_s4  ;;  %776 = vrot.lane.b32.xlu1 %v1262_v48, %s1311_s4 }
 0x223   :  { %582 = vrot.lane.b32.xlu0 %v1264_v0, %s1307_s27 }
 0x224   :  { %v2355_v45 = vpop.permute.xlu2 %592  ;;  %v575_v17 = vpop.permute.xlu1 %574 }
 0x225   :  { %v2358_v4 = vsel %vm978_vm10, %v965_v10, %v575_v17  ;;  %v573_v3 = vpop.permute.xlu0 %572  ;;  %v991_v31 = vsel %vm978_vm10, %v2338_v32, %v2355_v45 }
 0x226   :  { %v2362_v41 = vsel %vm978_vm10, %v2240_v1, %v573_v3 }
 0x22a   :  { %676 = vrot.lane.b32.xlu2 %v1263_v34, %s1309_s29  ;;  %630 = vrot.lane.b32.xlu1 %v1264_v0, %s1308_s28 }
 0x22b   :  { %628 = vrot.lane.b32.xlu0 %v1263_v34, %s1308_s28 }
 0x22c   :  { %v791_v23 = vpop.permute.xlu2 %790  ;;  %v599_v49 = vpop.permute.xlu1 %598 }
 0x22d   :  { %v597_v12 = vpop.permute.xlu0 %596  ;;  %v994_v59 = vsel %vm978_vm10, %v977_v58, %v599_v49 }
 0x22e   :  { %v993_v36 = vsel %vm978_vm10, %v976_v2, %v597_v12  ;;  %v1269_v2 = vld [vmem:[%s2559_s1 + $0x8] sm:$0xff] }
 0x22f   :  { %v1010_v33 = vsel %vm995_vm11, %v993_v36, %v645_v54 }
 0x232   :  { %726 = vrot.lane.b32.xlu2 %v1264_v0, %s1310_s30  ;;  %724 = vrot.lane.b32.xlu1 %v1263_v34, %s1310_s30 }
 0x233   :  { %678 = vrot.lane.b32.xlu0 %v1264_v0, %s1309_s29 }
 0x234   :  { %v2370_v15 = vpop.permute.xlu2 %688  ;;  %v693_v50 = vpop.permute.xlu1 %692 }
 0x235   :  { %v647_v1 = vpop.permute.xlu0 %646  ;;  %v1027_v9 = vsel %vm1012_vm12, %v1010_v33, %v693_v50 }
 0x236   :  { %v1011_v18 = vsel %vm995_vm11, %v994_v59, %v647_v1 }
 0x237   :  { %v1028_v60 = vsel %vm1012_vm12, %v1011_v18, %v695_v8 }
 0x23a   :  { %774 = vrot.lane.b32.xlu2 %v1264_v0, %s1311_s4  ;;  %772 = vrot.lane.b32.xlu1 %v1263_v34, %s1311_s4 }
 0x23b   :  { %578 = vrot.lane.b32.xlu0 %v1265_v19, %s1307_s27 }
 0x23c   :  { %v2387_v46 = vpop.permute.xlu2 %738  ;;  %v743_v53 = vpop.permute.xlu1 %742 }
 0x23d   :  { %v1045_v16 = vsel %vm1029_vm13, %v1028_v60, %v743_v53  ;;  %v741_v5 = vpop.permute.xlu0 %740 }
 0x23e   :  { %v1062_v22 = vsel %vm1046_vm14, %v1045_v16, %v791_v23  ;;  %v1044_v38 = vsel %vm1029_vm13, %v1027_v9, %v741_v5  ;;  %v1268_v23 = vld [vmem:[%s2559_s1 + $0x18] sm:$0xff] }
 0x23f   :  { %v1082_v35 = vsub.f32 %v2385_v56, %v1062_v22  ;;  %v1270_v22 = vld [vmem:[%s2559_s1] sm:$0xff] }
 0x241   :  { %v1098_v42 = vmul.f32 50.0, %v1082_v35 }
 0x242   :  { %672 = vrot.lane.b32.xlu2 %v1266_v30, %s1309_s29  ;;  %626 = vrot.lane.b32.xlu1 %v1265_v19, %s1308_s28 }
 0x243   :  { %624 = vrot.lane.b32.xlu0 %v1266_v30, %s1308_s28  ;;  %1227 = vtanh.f32 %v1098_v42 }
 0x244   :  { %v785_v13 = vpop.permute.xlu2 %784  ;;  %v789_v62 = vpop.permute.xlu1 %788 }
 0x245   :  { %v1061_v63 = vsel %vm1046_vm14, %v1044_v38, %v789_v62  ;;  %v595_v28 = vpop.permute.xlu0 %594 }
 0x246   :  { %v1081_v55 = vsub.f32 %v2385_v56, %v1061_v63  ;;  %v992_v50 = vsel %vm978_vm10, %v2334_v43, %v595_v28 }
 0x248   :  { %v1097_v10 = vmul.f32 50.0, %v1081_v55 }
 0x249   :  { %v1228_v27 = vpop.eup %1227 }
 0x24a   :  { %1229 = vtanh.f32 %v1097_v10  ;;  %722 = vrot.lane.b32.xlu2 %v1265_v19, %s1310_s30  ;;  %720 = vrot.lane.b32.xlu1 %v1266_v30, %s1310_s30  ;;  %v1130_v20 = vmul.f32 0.5, %v1228_v27 }
 0x24b   :  { %674 = vrot.lane.b32.xlu0 %v1265_v19, %s1309_s29 }
 0x24c   :  { %v2411_v48 = vpop.permute.xlu2 %638  ;;  %v643_v29 = vpop.permute.xlu1 %642  ;;  %v1146_v14 = vadd.f32 0.5, %v1130_v20 }
 0x24d   :  { %v641_v57 = vpop.permute.xlu0 %640  ;;  %v1009_v1 = vsel %vm995_vm11, %v992_v50, %v643_v29 }
 0x24e   :  { %v1008_v37 = vsel %vm995_vm11, %v991_v31, %v641_v57 }
 0x24f   :  { %v1025_v17 = vsel %vm1012_vm12, %v1008_v37, %v2370_v15 }
 0x250   :  { %v1230_v51 = vpop.eup %1229 }
 0x251   :  { %v1129_v24 = vmul.f32 0.5, %v1230_v51 }
 0x252   :  { %620 = vrot.lane.b32.xlu2 %v1267_v7, %s1308_s28  ;;  %770 = vrot.lane.b32.xlu1 %v1265_v19, %s1311_s4 }
 0x253   :  { %768 = vrot.lane.b32.xlu0 %v1266_v30, %s1311_s4  ;;  %v1145_v54 = vadd.f32 0.5, %v1129_v24 }
 0x254   :  { %v2422_v34 = vpop.permute.xlu2 %732  ;;  %v737_v8 = vpop.permute.xlu1 %736 }
 0x255   :  { %v691_v25 = vpop.permute.xlu0 %690  ;;  %v1163_v0 = vpack.c.bf16 %v1146_v14, %v1145_v54  ;;  %v1042_v3 = vsel %vm1029_vm13, %v1025_v17, %v737_v8 }
 0x256   :  { %v1059_v32 = vsel %vm1046_vm14, %v1042_v3, %v785_v13  ;;  %v1026_v58 = vsel %vm1012_vm12, %v1009_v1, %v691_v25 }
 0x257   :  { %1164 = vmatpush.bf16.msra.mxu0 %v1163_v0  ;;  %v1079_v15 = vsub.f32 %v2385_v56, %v1059_v32  ;;  %v1043_v53 = vsel %vm1029_vm13, %v1026_v58, %v2387_v46 }
 0x259   :  { %v1095_v59 = vmul.f32 50.0, %v1079_v15 }
 0x25a   :  { %670 = vrot.lane.b32.xlu2 %v1268_v23, %s1309_s29  ;;  %668 = vrot.lane.b32.xlu1 %v1267_v7, %s1309_s29 }
 0x25b   :  { %622 = vrot.lane.b32.xlu0 %v1268_v23, %s1308_s28  ;;  %1231 = vtanh.f32 %v1095_v59 }
 0x25c   :  { %v2435_v45 = vpop.permute.xlu2 %586  ;;  %v591_v49 = vpop.permute.xlu1 %590 }
 0x25d   :  { %v589_v12 = vpop.permute.xlu0 %588  ;;  %v990_v10 = vsel %vm978_vm10, %v2278_v40, %v591_v49 }
 0x25e   :  { %v989_v27 = vsel %vm978_vm10, %v2324_v6, %v589_v12  ;;  %v1007_v57 = vsel %vm995_vm11, %v990_v10, %v2411_v48 }
 0x261   :  { %v1232_v35 = vpop.eup %1231 }
 0x262   :  { %764 = vrot.lane.b32.xlu2 %v1267_v7, %s1311_s4  ;;  %718 = vrot.lane.b32.xlu1 %v1268_v23, %s1310_s30  ;;  %v1127_v30 = vmul.f32 0.5, %v1232_v35 }
 0x263   :  { %716 = vrot.lane.b32.xlu0 %v1267_v7, %s1310_s30 }
 0x264   :  { %v2445_v18 = vpop.permute.xlu2 %632  ;;  %v637_v19 = vpop.permute.xlu1 %636  ;;  %v1143_v13 = vadd.f32 0.5, %v1127_v30 }
 0x265   :  { %v787_v60 = vpop.permute.xlu0 %786  ;;  %v1006_v29 = vsel %vm995_vm11, %v989_v27, %v637_v19 }
 0x266   :  { %v1060_v43 = vsel %vm1046_vm14, %v1043_v53, %v787_v60 }
 0x267   :  { %v1080_v16 = vsub.f32 %v2385_v56, %v1060_v43 }
 0x269   :  { %v1096_v5 = vmul.f32 50.0, %v1080_v16 }
 0x26a   :  { %618 = vrot.lane.b32.xlu2 %v1269_v2, %s1308_s28  ;;  %616 = vrot.lane.b32.xlu1 %v1270_v22, %s1308_s28 }
 0x26b   :  { %1233 = vtanh.f32 %v1096_v5  ;;  %766 = vrot.lane.b32.xlu0 %v1268_v23, %s1311_s4  ;;  %v988_v23 = vsel %vm978_vm10, %v2328_v11, %v2435_v45 }
 0x26c   :  { %v683_v46 = vpop.permute.xlu2 %682  ;;  %v687_v36 = vpop.permute.xlu1 %686 }
 0x26d   :  { %v685_v33 = vpop.permute.xlu0 %684  ;;  %v1024_v51 = vsel %vm1012_vm12, %v1007_v57, %v687_v36 }
 0x26e   :  { %v1023_v20 = vsel %vm1012_vm12, %v1006_v29, %v685_v33 }
 0x26f   :  { %v1040_v7 = vsel %vm1029_vm13, %v1023_v20, %v2422_v34 }
 0x271   :  { %v1234_v42 = vpop.eup %1233 }
 0x272   :  { %666 = vrot.lane.b32.xlu1 %v1269_v2, %s1309_s29  ;;  %v1128_v9 = vmul.f32 0.5, %v1234_v42  ;;  %712 = vrot.lane.b32.xlu2 %v1270_v22, %s1310_s30 }
 0x273   :  { %664 = vrot.lane.b32.xlu0 %v1270_v22, %s1309_s29  ;;  %s1314_s29 = smov [#allocation2]  }
 0x274   :  { %v585_v38 = vpop.permute.xlu1 %584  ;;  %v1144_v62 = vadd.f32 0.5, %v1128_v9  ;;  %v2463_v28 = vpop.permute.xlu2 %580 }
 0x275   :  { %v735_v63 = vpop.permute.xlu0 %734  ;;  %v987_v11 = vsel %vm978_vm10, %v2264_v21, %v585_v38 }
 0x276   :  { %v1162_v55 = vpack.c.bf16 %v1144_v62, %v1143_v13  ;;  %v1041_v40 = vsel %vm1029_vm13, %v1024_v51, %v735_v63  ;;  %v1004_v16 = vsel %vm995_vm11, %v987_v11, %v2445_v18 }
 0x278   :  { %1165 = vmatpush.bf16.msra.mxu0 %v1162_v55 }
 0x27a   :  { %760 = vrot.lane.b32.xlu1 %v1270_v22, %s1311_s4  ;;  %762 = vrot.lane.b32.xlu2 %v1269_v2, %s1311_s4 }
 0x27b   :  { %714 = vrot.lane.b32.xlu0 %v1269_v2, %s1310_s30  ;;  %s1184_s30 = sshll.u32 %s1314_s29, 4  ;;  %s1185_s30 = int_to_ptr.vmem [resolvable:$true] %s1184_s30 }
 0x27c   :  { %v783_v24 = vpop.permute.xlu1 %782  ;;  %v779_v8 = vpop.permute.xlu2 %778 }
 0x27d   :  { %v1058_v6 = vsel %vm1046_vm14, %v1041_v40, %v783_v24  ;;  %v781_v54 = vpop.permute.xlu0 %780  ;;  %v985_v24 = vsel %vm978_vm10, %v2315_v61, %v2463_v28 }
 0x27e   :  { %v1078_v48 = vsub.f32 %v2385_v56, %v1058_v6  ;;  %v1057_v14 = vsel %vm1046_vm14, %v1040_v7, %v781_v54 }
 0x27f   :  { %v1077_v31 = vsub.f32 %v2385_v56, %v1057_v14 }
 0x280   :  { %v1094_v37 = vmul.f32 50.0, %v1078_v48 }
 0x281   :  { %v1093_v25 = vmul.f32 50.0, %v1077_v31 }
 0x282   :  { %1235 = vtanh.f32 %v1094_v37 }
 0x283   :  { %1237 = vtanh.f32 %v1093_v25 }
 0x284   :  { %v681_v0 = vpop.permute.xlu1 %680  ;;  %v677_v12 = vpop.permute.xlu2 %676 }
 0x285   :  { %v635_v17 = vpop.permute.xlu0 %634  ;;  %v1021_v2 = vsel %vm1012_vm12, %v1004_v16, %v681_v0 }
 0x286   :  { %v1005_v32 = vsel %vm995_vm11, %v988_v23, %v635_v17 }
 0x287   :  { %v1022_v58 = vsel %vm1012_vm12, %v1005_v32, %v683_v46 }
 0x288   :  { %v1236_v3 = vpop.eup %1235 }
 0x289   :  { %v1238_v34 = vpop.eup %1237  ;;  %v1126_v49 = vmul.f32 0.5, %v1236_v3 }
 0x28a   :  { %v1125_v15 = vmul.f32 0.5, %v1238_v34 }
 0x28b   :  { %v1142_v50 = vadd.f32 0.5, %v1126_v49 }
 0x28c   :  { %v731_v1 = vpop.permute.xlu1 %730  ;;  %v1141_v59 = vadd.f32 0.5, %v1125_v15  ;;  %v727_v22 = vpop.permute.xlu2 %726 }
 0x28d   :  { %v1039_v19 = vsel %vm1029_vm13, %v1022_v58, %v731_v1  ;;  %v729_v53 = vpop.permute.xlu0 %728 }
 0x28e   :  { %v1056_v60 = vsel %vm1046_vm14, %v1039_v19, %v779_v8  ;;  %v1161_v43 = vpack.c.bf16 %v1142_v50, %v1141_v59  ;;  %v1038_v46 = vsel %vm1029_vm13, %v1021_v2, %v729_v53 }
 0x28f   :  { %v1076_v45 = vsub.f32 %v2385_v56, %v1056_v60 }
 0x290   :  { %1166 = vmatpush.bf16.msra.mxu0 %v1161_v43 }
 0x291   :  { %v1092_v5 = vmul.f32 50.0, %v1076_v45 }
 0x293   :  { %1239 = vtanh.f32 %v1092_v5 }
 0x294   :  { %v777_v36 = vpop.permute.xlu1 %776  ;;  %v775_v13 = vpop.permute.xlu2 %774 }
 0x295   :  { %v1055_v35 = vsel %vm1046_vm14, %v1038_v46, %v777_v36  ;;  %v583_v33 = vpop.permute.xlu0 %582 }
 0x296   :  { %v1075_v30 = vsub.f32 %v2385_v56, %v1055_v35  ;;  %v986_v27 = vsel %vm978_vm10, %v2311_v47, %v583_v33 }
 0x298   :  { %v1091_v21 = vmul.f32 50.0, %v1075_v30 }
 0x299   :  { %v1240_v42 = vpop.eup %1239 }
 0x29a   :  { %1241 = vtanh.f32 %v1091_v21  ;;  %v1124_v18 = vmul.f32 0.5, %v1240_v42 }
 0x29c   :  { %v631_v9 = vpop.permute.xlu1 %630  ;;  %v1140_v10 = vadd.f32 0.5, %v1124_v18  ;;  %v673_v7 = vpop.permute.xlu2 %672 }
 0x29d   :  { %v629_v38 = vpop.permute.xlu0 %628  ;;  %v1003_v57 = vsel %vm995_vm11, %v986_v27, %v631_v9 }
 0x29e   :  { %v1002_v54 = vsel %vm995_vm11, %v985_v24, %v629_v38 }
 0x29f   :  { %v1019_v14 = vsel %vm1012_vm12, %v1002_v54, %v677_v12 }
 0x2a0   :  { %v1242_v62 = vpop.eup %1241 }
 0x2a1   :  { %v1123_v63 = vmul.f32 0.5, %v1242_v62 }
 0x2a3   :  { %v1139_v55 = vadd.f32 0.5, %v1123_v63 }
 0x2a4   :  { %v725_v29 = vpop.permute.xlu1 %724  ;;  %v723_v17 = vpop.permute.xlu2 %722 }
 0x2a5   :  { %v679_v20 = vpop.permute.xlu0 %678  ;;  %v1160_v51 = vpack.c.bf16 %v1140_v10, %v1139_v55  ;;  %v1036_v8 = vsel %vm1029_vm13, %v1019_v14, %v725_v29 }
 0x2a6   :  { %v1020_v40 = vsel %vm1012_vm12, %v1003_v57, %v679_v20 }
 0x2a7   :  { %v1037_v6 = vsel %vm1029_vm13, %v1020_v40, %v727_v22  ;;  %1167 = vmatpush.bf16.msra.mxu0 %v1160_v51 }
 0x2a8   :  { %v1054_v48 = vsel %vm1046_vm14, %v1037_v6, %v775_v13 }
 0x2a9   :  { %v1074_v47 = vsub.f32 %v2385_v56, %v1054_v48 }
 0x2ab   :  { %v1090_v31 = vmul.f32 50.0, %v1074_v47 }
 0x2ac   :  { %v773_v37 = vpop.permute.xlu1 %772  ;;  %v621_v1 = vpop.permute.xlu2 %620 }
 0x2ad   :  { %v1053_v25 = vsel %vm1046_vm14, %v1036_v8, %v773_v37  ;;  %v579_v0 = vpop.permute.xlu0 %578  ;;  %1243 = vtanh.f32 %v1090_v31  ;;  %v998_v55 = vsel %vm995_vm11, %v2362_v41, %v621_v1 }
 0x2ae   :  { %v1073_v61 = vsub.f32 %v2385_v56, %v1053_v25  ;;  %v984_v53 = vsel %vm978_vm10, %v2252_v52, %v579_v0 }
 0x2b0   :  { %v1089_v28 = vmul.f32 50.0, %v1073_v61 }
 0x2b2   :  { %1245 = vtanh.f32 %v1089_v28 }
 0x2b3   :  { %v1244_v3 = vpop.eup %1243 }
 0x2b4   :  { %v627_v23 = vpop.permute.xlu1 %626  ;;  %v1122_v32 = vmul.f32 0.5, %v1244_v3  ;;  %v671_v36 = vpop.permute.xlu2 %670 }
 0x2b5   :  { %v625_v34 = vpop.permute.xlu0 %624  ;;  %v1001_v60 = vsel %vm995_vm11, %v984_v53, %v627_v23 }
 0x2b6   :  { %v1138_v50 = vadd.f32 0.5, %v1122_v32  ;;  %v1000_v43 = vsel %vm995_vm11, %v2321_v26, %v625_v34 }
 0x2b7   :  { %v1017_v45 = vsel %vm1012_vm12, %v1000_v43, %v673_v7 }
 0x2b8   :  { %v1246_v49 = vpop.eup %1245 }
 0x2b9   :  { %v1121_v15 = vmul.f32 0.5, %v1246_v49 }
 0x2bb   :  { %v1137_v12 = vadd.f32 0.5, %v1121_v15 }
 0x2bc   :  { %v721_v58 = vpop.permute.xlu1 %720  ;;  %v765_v38 = vpop.permute.xlu2 %764 }
 0x2bd   :  { %v675_v59 = vpop.permute.xlu0 %674  ;;  %v1159_v19 = vpack.c.bf16 %v1138_v50, %v1137_v12  ;;  %v1034_v2 = vsel %vm1029_vm13, %v1017_v45, %v721_v58 }
 0x2be   :  { %v1018_v11 = vsel %vm1012_vm12, %v1001_v60, %v675_v59 }
 0x2bf   :  { %1168 = vmatpush.bf16.msra.mxu0 %v1159_v19  ;;  %v1035_v5 = vsel %vm1029_vm13, %v1018_v11, %v723_v17 }
 0x2c4   :  { %v771_v16 = vpop.permute.xlu1 %770  ;;  %v619_v7 = vpop.permute.xlu2 %618 }
 0x2c5   :  { %v1052_v22 = vsel %vm1046_vm14, %v1035_v5, %v771_v16  ;;  %v769_v46 = vpop.permute.xlu0 %768  ;;  %v997_v49 = vsel %vm995_vm11, %v2308_v39, %v619_v7  ;;  %v1147_v5 = vlaneseq }
 0x2c6   :  { %v1072_v52 = vsub.f32 %v2385_v56, %v1052_v22  ;;  %v1051_v35 = vsel %vm1046_vm14, %v1034_v2, %v769_v46 }
 0x2c7   :  { %v1071_v33 = vsub.f32 %v2385_v56, %v1051_v35 }
 0x2c8   :  { %v1088_v26 = vmul.f32 50.0, %v1072_v52  ;;  %v1226_v52 = vld [vmem:[%s2560_s2] ss:$0 sm:$0xff] }
 0x2c9   :  { %v1087_v30 = vmul.f32 50.0, %v1071_v33 }
 0x2ca   :  { %1247 = vtanh.f32 %v1088_v26 }
 0x2cb   :  { %1249 = vtanh.f32 %v1087_v30 }
 0x2cc   :  { %v669_v21 = vpop.permute.xlu1 %668  ;;  %v713_v25 = vpop.permute.xlu2 %712 }
 0x2cd   :  { %v623_v42 = vpop.permute.xlu0 %622  ;;  %v1015_v29 = vsel %vm1012_vm12, %v998_v55, %v669_v21 }
 0x2ce   :  { %v999_v6 = vsel %vm995_vm11, %v2358_v4, %v623_v42  ;;  %v1312_v4 = vmov 0.0  }
 0x2cf   :  { %v1016_v41 = vsel %vm1012_vm12, %v999_v6, %v671_v36  ;;  %55 = vst [vmem:[#allocation2] sm:$0x3] %v1312_v4  ;;  %v1148_v36 = vshrl.u32 %v1147_v5, 7 }
 0x2d0   :  { %v1248_v9 = vpop.eup %1247 }
 0x2d1   :  { %v1250_v13 = vpop.eup %1249  ;;  %v1120_v18 = vmul.f32 0.5, %v1248_v9  ;;  %vm1151_vm15 = vcmp.eq.s32.totalorder %v1226_v52, %v1148_v36 }
 0x2d2   :  { %v1119_v62 = vmul.f32 0.5, %v1250_v13  ;;  %vm1205_vm0 = vmpackc.low %vm1151_vm15, %vm1151_vm15 }
 0x2d3   :  { %v1136_v63 = vadd.f32 0.5, %v1120_v18 }
 0x2d4   :  { %v719_v10 = vpop.permute.xlu1 %718  ;;  %v1135_v27 = vadd.f32 0.5, %v1119_v62  ;;  %v763_v50 = vpop.permute.xlu2 %762 }
 0x2d5   :  { %v717_v57 = vpop.permute.xlu0 %716  ;;  %v1033_v47 = vsel %vm1029_vm13, %v1016_v41, %v719_v10 }
 0x2d6   :  { %v1032_v20 = vsel %vm1029_vm13, %v1015_v29, %v717_v57  ;;  %v1158_v51 = vpack.c.bf16 %v1136_v63, %v1135_v27  ;;  %v1155_v21 = vld [vmem:[#allocation2] sm:$0x3] }
 0x2d7   :  { %v1049_v40 = vsel %vm1046_vm14, %v1032_v20, %v765_v38 }
 0x2d8   :  { %v1069_v24 = vsub.f32 %v2385_v56, %v1049_v40  ;;  %1169 = vmatpush.bf16.msra.mxu0 %v1158_v51 }
 0x2da   :  { %v1085_v54 = vmul.f32 50.0, %v1069_v24 }
 0x2dc   :  { %v617_v48 = vpop.permute.xlu1 %616  ;;  %1251 = vtanh.f32 %v1085_v54 }
 0x2dd   :  { %v767_v14 = vpop.permute.xlu0 %766  ;;  %v996_v17 = vsel %vm995_vm11, %v2347_v44, %v617_v48 }
 0x2de   :  { %v1050_v31 = vsel %vm1046_vm14, %v1033_v47, %v767_v14 }
 0x2df   :  { %v1070_v8 = vsub.f32 %v2385_v56, %v1050_v31 }
 0x2e1   :  { %v1086_v37 = vmul.f32 50.0, %v1070_v8 }
 0x2e2   :  { %v1252_v61 = vpop.eup %1251 }
 0x2e3   :  { %1253 = vtanh.f32 %v1086_v37  ;;  %v1117_v3 = vmul.f32 0.5, %v1252_v61 }
 0x2e4   :  { %v667_v0 = vpop.permute.xlu1 %666 }
 0x2e5   :  { %v665_v28 = vpop.permute.xlu0 %664  ;;  %v1133_v1 = vadd.f32 0.5, %v1117_v3  ;;  %v1014_v59 = vsel %vm1012_vm12, %v997_v49, %v667_v0 }
 0x2e6   :  { %v1013_v34 = vsel %vm1012_vm12, %v996_v17, %v665_v28 }
 0x2e7   :  { %v1030_v15 = vsel %vm1029_vm13, %v1013_v34, %v713_v25 }
 0x2e9   :  { %v1254_v23 = vpop.eup %1253 }
 0x2ea   :  { %v1118_v32 = vmul.f32 0.5, %v1254_v23 }
 0x2ec   :  { %v761_v12 = vpop.permute.xlu1 %760  ;;  %v1134_v58 = vadd.f32 0.5, %v1118_v32 }
 0x2ed   :  { %v1047_v19 = vsel %vm1046_vm14, %v1030_v15, %v761_v12  ;;  %v715_v53 = vpop.permute.xlu0 %714 }
 0x2ee   :  { %v1067_v44 = vsub.f32 %v2385_v56, %v1047_v19  ;;  %v1031_v60 = vsel %vm1029_vm13, %v1014_v59, %v715_v53  ;;  %v1157_v43 = vpack.c.bf16 %v1134_v58, %v1133_v1 }
 0x2ef   :  { %v1048_v11 = vsel %vm1046_vm14, %v1031_v60, %v763_v50 }
 0x2f0   :  { %v1083_v45 = vmul.f32 50.0, %v1067_v44  ;;  %v1068_v39 = vsub.f32 %v2385_v56, %v1048_v11  ;;  %1170 = vmatpush.bf16.msra.mxu0 %v1157_v43  ;;  %v1313_v56 = vmov 1.0|1.0  }
 0x2f2   :  { %1255 = vtanh.f32 %v1083_v45  ;;  %v1084_v16 = vmul.f32 50.0, %v1068_v39 }
 0x2f4   :  { %1257 = vtanh.f32 %v1084_v16 }
 0x2f8   :  { %v1256_v2 = vpop.eup %1255 }
 0x2f9   :  { %v1115_v22 = vmul.f32 0.5, %v1256_v2 }
 0x2fa   :  { %v1258_v46 = vpop.eup %1257 }
 0x2fb   :  { %v1116_v35 = vmul.f32 0.5, %v1258_v46  ;;  %v1131_v33 = vadd.f32 0.5, %v1115_v22 }
 0x2fd   :  { %v1132_v26 = vadd.f32 0.5, %v1116_v35 }
 0x2ff   :  { %v1156_v30 = vpack.c.bf16 %v1132_v26, %v1131_v33 }
 0x301   :  { %1171 = vmatpush.bf16.msra.mxu0 %v1156_v30 }
 0x304   :  { %1206 = vmatmul.msk.bf16.vlgmr.msra.gmra.mxu0 %vm1205_vm0, %v1313_v56 }
 0x381   :  { %v1173_v42 = vpop.f32.mrf.mxu0 }
 0x382   :  { %v1177_v9 = vadd.f32 %v1173_v42, %v1155_v21 }
 0x384   :  { %1178 = vst [vmem:[#allocation2] sm:$0x3] %v1177_v9 }
 0x385   :  { %1189 = dma.vmem_to_hbm [thread:$0]  %s1185_s30, 32, %s1187_s8, [#allocation3]  }
 0x389   :  { %v1175_v38 = vpop.f32.mrf.mxu0 }
 0x38a   :  { %1295 = dma.done.wait [#allocation3], 32  }
 0x38b   :  { %1296 = vsyncadd [#allocation3], 4294967264 }
 0x38c   :  { %1194 = vsyncpa [#allocation3], 1 }

</bundles_post_ra>
